<compile_context>
chip_gen: v7x
topology: tpu7x:2x2x1
jax: 0.10.0
libtpu: 0.0.40
codegen_flags: <defaults>
</compile_context>

<pallas_src>
import functools

import jax
import jax.numpy as jnp
from jax.experimental import pallas as pl
from jax.experimental.pallas import tpu as pltpu


def _sigmoid(x):
    # sigmoid(x) == 0.5*(tanh(x/2)+1): one EUP transcendental instead of
    # exp + reciprocal.  EUP is single-issue on every TPU generation, so this
    # halves the transcendental cost of the two full-map SiLUs + the SE gate.
    return 0.5 * (jnp.tanh(0.5 * x) + 1.0)


def _silu(x):
    return x * _sigmoid(x)


def _conv1x1_vpu(w, a):
    """(Co,Ci) @ (Ci,L) -> (Co,L) as an unrolled VPU MAC chain.

    Contraction dims of 4..16 would occupy <2% of an MXU tile and pay full
    push/pop latency plus dtype casts; a broadcast-multiply-accumulate over Ci
    channels on the VPU is cheaper and keeps everything in f32.
    """
    Ci = w.shape[1]
    acc = w[:, 0:1] * a[0:1, :]
    for ci in range(1, Ci):
        acc = acc + w[:, ci:ci + 1] * a[ci:ci + 1, :]
    return acc


def _dw_valid_masks(K, H, W):
    """(K*K, H*W) float mask: 1.0 where tap (dh, dw) reads inside the image."""
    P = (K - 1) // 2
    rows = jnp.arange(H)[:, None]
    cols = jnp.arange(W)[None, :]
    masks = []
    for dh in range(-P, P + 1):
        for dw in range(-P, P + 1):
            ok = ((rows + dh >= 0) & (rows + dh < H) &
                  (cols + dw >= 0) & (cols + dw < W))
            masks.append(ok.reshape(H * W))
    return jnp.stack(masks, axis=0).astype(jnp.float32)


def mbconv_kernel(x_ref, mask_ref, w_exp_ref, b_exp_ref, w_dw_ref, b_dw_ref,
                  w_ser_ref, b_ser_ref, w_see_ref, b_see_ref,
                  w_prj_ref, b_prj_ref, out_ref,
                  *, K, W, HW, B_blk, has_shortcut):
    P = (K - 1) // 2
    L = B_blk * HW
    x = x_ref[...]                                   # (Cin, L) f32, channel-major

    # ---- expand 1x1 conv (BN folded) + SiLU ------------------------ VPU MAC
    y = _silu(_conv1x1_vpu(w_exp_ref[...], x) + b_exp_ref[...])    # (Cexp, L)

    # ---- depthwise KxK conv, stride 1 (BN folded) + SiLU
    # Register-resident: lane rolls (XLU) + precomputed boundary masks.  No
    # padded VMEM scratch, no zero-fill; any tap that would cross an image
    # boundary within the B_blk*HW slab is exactly a masked position.
    w_dw_all = w_dw_ref[...]                         # (K*K, Cexp, 1) f32
    masks_all = mask_ref[...]                        # (K*K, 1, L)    f32 {0,1}
    acc = jnp.zeros_like(y)
    t = 0
    for dh in range(-P, P + 1):
        for dw in range(-P, P + 1):
            off = dh * W + dw
            if off == 0:
                tap = y                              # center tap: no shift/mask
            else:
                tap = pltpu.roll(y, shift=(-off) % L, axis=1) * masks_all[t]
            acc = acc + tap * w_dw_all[t]
            t += 1
    fm = _silu(acc + b_dw_ref[...])                  # (Cexp, L) f32

    # ---- squeeze-excite: per-image global pool + tiny 1x1s (VPU/XLU only)
    w_ser = w_ser_ref[...]                           # (Cexp, Csq)
    b_ser = b_ser_ref[...]                           # (1, Csq)
    w_see = w_see_ref[...]                           # (Cexp, Csq)
    b_see = b_see_ref[...]                           # (Cexp, 1)
    scaled = []
    for b in range(B_blk):                           # static unroll, B_blk small
        sl = fm[:, b * HW:(b + 1) * HW]              # (Cexp, HW): image b
        pooled = jnp.mean(sl, axis=1, keepdims=True)                    # (Cexp,1)
        mid = _silu(jnp.sum(w_ser * pooled, axis=0, keepdims=True) + b_ser)
        gate = _sigmoid(jnp.sum(w_see * mid, axis=1, keepdims=True) + b_see)
        scaled.append(sl * gate)
    fm = scaled[0] if B_blk == 1 else jnp.concatenate(scaled, axis=1)

    # ---- project 1x1 conv (BN folded), no activation ---------------- VPU MAC
    out = _conv1x1_vpu(w_prj_ref[...], fm) + b_prj_ref[...]        # (Cout, L)

    if has_shortcut:
        out = out + x                                # DropPath = identity (eval)

    out_ref[...] = out.astype(out_ref.dtype)


def _pick_batch_block(N, HW, max_lanes=2048):
    """Largest divisor of N with B_blk*HW <= max_lanes that still leaves >= 2
    grid steps when N >= 2 (keeps both v7x TensorCores fed)."""
    best = 1
    for b in range(1, N + 1):
        if N % b:
            continue
        if b * HW > max_lanes:
            continue
        if N >= 2 and N // b < 2:
            continue
        best = b
    return best


def mbconv_pallas(x_nchw, params, *, kernel_size, stride, has_shortcut,
                  batch_block=None):
    # TODO(synk): stride=2 depthwise path not implemented (the residual MBConv
    # variant exercised here uses stride=1); DropPath is identity in eval mode.
    assert stride == 1, "stride=2 not implemented in this kernel"
    N, Cin, H, W = x_nchw.shape
    K = kernel_size
    HW = H * W
    Cout = params["w_prj"].shape[0]

    B_blk = batch_block if batch_block is not None else _pick_batch_block(N, HW)
    assert N % B_blk == 0
    L = B_blk * HW

    # Channel-major, batch-flattened layout: the 128-lane axis carries B_blk*HW
    # pixels per grid step (lane-dense in/out, big VPU ops, few grid steps).
    x_cm = jnp.transpose(x_nchw.reshape(N, Cin, HW), (1, 0, 2)).reshape(Cin, N * HW)

    # Per-tap depthwise weights / validity masks, indexed on a leading axis and
    # tiled to the B_blk-image slab.
    w_dw = jnp.transpose(params["w_dw"], (1, 0))[:, :, None]            # (K*K,Cexp,1)
    masks = jnp.tile(_dw_valid_masks(K, H, W), (1, B_blk))[:, None, :]  # (K*K,1,L)

    kern = functools.partial(mbconv_kernel, K=K, W=W, HW=HW, B_blk=B_blk,
                             has_shortcut=has_shortcut)

    def rep_spec(a):
        nd = a.ndim
        return pl.BlockSpec(a.shape, lambda b, _nd=nd: (0,) * _nd)

    inputs = [x_cm, masks,
              params["w_exp"], params["b_exp"], w_dw, params["b_dw"],
              params["w_ser"], params["b_ser"], params["w_see"], params["b_see"],
              params["w_prj"], params["b_prj"]]
    in_specs = [pl.BlockSpec((Cin, L), lambda b: (0, b))]
    in_specs += [rep_spec(a) for a in inputs[1:]]

    out = pl.pallas_call(
        kern,
        out_shape=jax.ShapeDtypeStruct((Cout, N * HW), jnp.float32),
        grid_spec=pltpu.PrefetchScalarGridSpec(
            num_scalar_prefetch=0,
            grid=(N // B_blk,),                      # B_blk images per step
            in_specs=in_specs,
            out_specs=pl.BlockSpec((Cout, L), lambda b: (0, b)),
        ),
        compiler_params=pltpu.CompilerParams(
            dimension_semantics=("parallel",)),      # shard steps over v7x's 2 TCs
    )(*inputs)

    return jnp.transpose(out.reshape(Cout, N, HW), (1, 0, 2)).reshape(N, Cout, H, W)


def make_params(key, Cin, Cexp, Csq, Cout, K):
    """Deterministic synthetic parameters with eval-mode BatchNorm folded in."""
    eps = 1e-5
    ks = iter(jax.random.split(key, 24))             # 19 draws needed

    def conv_w(shape, fan_in):
        return jax.random.normal(next(ks), shape, jnp.float32) / jnp.sqrt(float(fan_in))

    def bn(C):
        gamma = 1.0 + 0.1 * jax.random.normal(next(ks), (C,), jnp.float32)
        beta = 0.1 * jax.random.normal(next(ks), (C,), jnp.float32)
        mean = 0.1 * jax.random.normal(next(ks), (C,), jnp.float32)
        var = jax.random.uniform(next(ks), (C,), jnp.float32, 0.5, 1.5)
        scale = gamma / jnp.sqrt(var + eps)
        shift = beta - mean * scale
        return scale, shift

    # expand 1x1 conv: torch weight (Cexp, Cin, 1, 1) -> (Cexp, Cin), BN folded
    w_exp = conv_w((Cexp, Cin), Cin)
    sc, sh = bn(Cexp)
    w_exp = w_exp * sc[:, None]
    b_exp = sh[:, None]                               # (Cexp, 1)

    # depthwise KxK conv: torch weight (Cexp, 1, K, K) -> (Cexp, K*K), BN folded
    w_dw = conv_w((Cexp, K * K), K * K)
    sc, sh = bn(Cexp)
    w_dw = w_dw * sc[:, None]
    b_dw = sh[:, None]                                # (Cexp, 1)

    # SE 1x1 convs (with bias, no BN); stored channel-major (Cexp, Csq)
    w_ser = conv_w((Cexp, Csq), Cexp)                 # conv_reduce weight (transposed)
    b_ser = 0.1 * jax.random.normal(next(ks), (1, Csq), jnp.float32)
    w_see = conv_w((Cexp, Csq), Csq)                  # conv_expand weight
    b_see = 0.1 * jax.random.normal(next(ks), (Cexp, 1), jnp.float32)

    # project 1x1 conv: torch weight (Cout, Cexp, 1, 1) -> (Cout, Cexp), BN folded
    w_prj = conv_w((Cout, Cexp), Cexp)
    sc, sh = bn(Cout)
    w_prj = w_prj * sc[:, None]
    b_prj = sh[:, None]                               # (Cout, 1)

    return dict(w_exp=w_exp, b_exp=b_exp, w_dw=w_dw, b_dw=b_dw,
                w_ser=w_ser, b_ser=b_ser, w_see=w_see, b_see=b_see,
                w_prj=w_prj, b_prj=b_prj)


def mbconv_ref(x_nchw, p, K, has_shortcut):
    """Pure-JAX f32 reference (NCHW), true-f32 contractions."""
    hp = jax.lax.Precision.HIGHEST
    N, Cin, H, W = x_nchw.shape
    P = (K - 1) // 2
    Cexp = p["w_exp"].shape[0]

    def mm(w, a):                                     # 1x1 conv as channel matmul
        return jnp.einsum("oc,nchw->nohw", w, a, precision=hp)

    x = x_nchw
    y = mm(p["w_exp"], x) + p["b_exp"].reshape(1, Cexp, 1, 1)
    y = y * jax.nn.sigmoid(y)

    yp = jnp.pad(y, ((0, 0), (0, 0), (P, P), (P, P)))
    acc = jnp.zeros_like(y)
    for kh in range(K):
        for kw in range(K):
            wk = p["w_dw"][:, kh * K + kw].reshape(1, Cexp, 1, 1)
            acc = acc + yp[:, :, kh:kh + H, kw:kw + W] * wk
    acc = acc + p["b_dw"].reshape(1, Cexp, 1, 1)
    acc = acc * jax.nn.sigmoid(acc)

    pooled = jnp.mean(acc, axis=(2, 3))               # (N, Cexp)
    mid = jnp.einsum("nc,cs->ns", pooled, p["w_ser"], precision=hp) + p["b_ser"]
    mid = mid * jax.nn.sigmoid(mid)
    gate = jnp.einsum("ns,cs->nc", mid, p["w_see"], precision=hp) + p["b_see"][:, 0][None, :]
    gate = jax.nn.sigmoid(gate)
    acc = acc * gate[:, :, None, None]

    out = mm(p["w_prj"], acc) + p["b_prj"].reshape(1, -1, 1, 1)
    if has_shortcut:
        out = out + x
    return out


def _check(out, ref, tag, atol=1e-3, rtol=1e-3):
    err = float(jnp.max(jnp.abs(out - ref)))
    if not bool(jnp.allclose(out, ref, atol=atol, rtol=rtol)):
        raise AssertionError(f"{tag}: mismatch vs f32 reference, max abs err = {err}")


if __name__ == "__main__":
    # MBConv config: kernel_size=3, input_c=4, out_c=4, expand_ratio=4,
    # stride=1, se_ratio=0.25, drop_rate=0.2 (eval mode -> DropPath is identity)
    Cin, H, W = 4, 16, 16
    kernel_size, expand_ratio, stride, se_ratio, Cout = 3, 4, 1, 0.25, 4
    Cexp = Cin * expand_ratio                         # 16
    Csq = int(Cin * se_ratio)                         # 1
    has_shortcut = (stride == 1 and Cin == Cout)

    key = jax.random.PRNGKey(0)
    kx1, kx2, kp = jax.random.split(key, 3)
    params = make_params(kp, Cin, Cexp, Csq, Cout, kernel_size)

    # Primary config (batch=2 -> B_blk=1, 2 grid steps, one per TensorCore).
    x = jax.random.normal(kx1, (2, Cin, H, W), jnp.float32)
    out = jax.block_until_ready(
        mbconv_pallas(x, params, kernel_size=kernel_size, stride=stride,
                      has_shortcut=has_shortcut))
    assert out.shape == (2, Cout, H, W)
    _check(out, mbconv_ref(x, params, kernel_size, has_shortcut), "N=2")

    # Batched-block path (batch=4 -> B_blk=2 images flattened on the lane axis,
    # still 2 grid steps): exercises the per-image SE pooling + wrap-masked
    # depthwise rolls on a multi-image slab.
    x4 = jax.random.normal(kx2, (4, Cin, H, W), jnp.float32)
    out4 = jax.block_until_ready(
        mbconv_pallas(x4, params, kernel_size=kernel_size, stride=stride,
                      has_shortcut=has_shortcut))
    assert out4.shape == (4, Cout, H, W)
    _check(out4, mbconv_ref(x4, params, kernel_size, has_shortcut), "N=4")

    print("KERNEL_OK")
</pallas_src>

<mosaic_0001>
module attributes {stable_mosaic.version = 11 : i64} {
  func.func @mbconv_kernel(%arg0: i32, %arg1: memref<4x256xf32, #tpu.memory_space<vmem>>, %arg2: memref<9x1x256xf32, #tpu.memory_space<vmem>>, %arg3: memref<16x4xf32, #tpu.memory_space<vmem>>, %arg4: memref<16x1xf32, #tpu.memory_space<vmem>>, %arg5: memref<9x16x1xf32, #tpu.memory_space<vmem>>, %arg6: memref<16x1xf32, #tpu.memory_space<vmem>>, %arg7: memref<16x1xf32, #tpu.memory_space<vmem>>, %arg8: memref<1x1xf32, #tpu.memory_space<vmem>>, %arg9: memref<16x1xf32, #tpu.memory_space<vmem>>, %arg10: memref<16x1xf32, #tpu.memory_space<vmem>>, %arg11: memref<4x16xf32, #tpu.memory_space<vmem>>, %arg12: memref<4x1xf32, #tpu.memory_space<vmem>>, %arg13: memref<4x256xf32, #tpu.memory_space<vmem>>) attributes {dimension_semantics = [#tpu.dimension_semantics<parallel>], iteration_bounds = array<i64: 2>, scalar_prefetch = 0 : i64, scratch_operands = 0 : i64, tpu.core_type = #tpu.core_type<tc>, window_params = [{transform_indices = @transform_0, window_bounds = array<i64: 4, 256>}, {pipeline_mode = #tpu.pipeline_mode<synchronous>, transform_indices = @transform_1, window_bounds = array<i64: 9, 1, 256>}, {pipeline_mode = #tpu.pipeline_mode<synchronous>, transform_indices = @transform_2, window_bounds = array<i64: 16, 4>}, {pipeline_mode = #tpu.pipeline_mode<synchronous>, transform_indices = @transform_3, window_bounds = array<i64: 16, 1>}, {pipeline_mode = #tpu.pipeline_mode<synchronous>, transform_indices = @transform_4, window_bounds = array<i64: 9, 16, 1>}, {pipeline_mode = #tpu.pipeline_mode<synchronous>, transform_indices = @transform_5, window_bounds = array<i64: 16, 1>}, {pipeline_mode = #tpu.pipeline_mode<synchronous>, transform_indices = @transform_6, window_bounds = array<i64: 16, 1>}, {pipeline_mode = #tpu.pipeline_mode<synchronous>, transform_indices = @transform_7, window_bounds = array<i64: 1, 1>}, {pipeline_mode = #tpu.pipeline_mode<synchronous>, transform_indices = @transform_8, window_bounds = array<i64: 16, 1>}, {pipeline_mode = #tpu.pipeline_mode<synchronous>, transform_indices = @transform_9, window_bounds = array<i64: 16, 1>}, {pipeline_mode = #tpu.pipeline_mode<synchronous>, transform_indices = @transform_10, window_bounds = array<i64: 4, 16>}, {pipeline_mode = #tpu.pipeline_mode<synchronous>, transform_indices = @transform_11, window_bounds = array<i64: 4, 1>}, {transform_indices = @transform_12, window_bounds = array<i64: 4, 256>}]} {
    %c0 = arith.constant 0 : index
    %c0_0 = arith.constant 0 : index
    %0 = vector.load %arg1[%c0, %c0_0] : memref<4x256xf32, #tpu.memory_space<vmem>>, vector<4x256xf32>
    %c0_1 = arith.constant 0 : index
    %c0_2 = arith.constant 0 : index
    %1 = vector.load %arg3[%c0_1, %c0_2] : memref<16x4xf32, #tpu.memory_space<vmem>>, vector<16x4xf32>
    %2 = vector.extract_strided_slice %1 {offsets = [0, 0], sizes = [16, 1], strides = [1, 1]} : vector<16x4xf32> to vector<16x1xf32>
    %3 = vector.extract_strided_slice %0 {offsets = [0, 0], sizes = [1, 256], strides = [1, 1]} : vector<4x256xf32> to vector<1x256xf32>
    %4 = vector.broadcast %2 : vector<16x1xf32> to vector<16x256xf32>
    %5 = vector.broadcast %3 : vector<1x256xf32> to vector<16x256xf32>
    %6 = arith.mulf %4, %5 : vector<16x256xf32>
    %7 = vector.extract_strided_slice %1 {offsets = [0, 1], sizes = [16, 1], strides = [1, 1]} : vector<16x4xf32> to vector<16x1xf32>
    %8 = vector.extract_strided_slice %0 {offsets = [1, 0], sizes = [1, 256], strides = [1, 1]} : vector<4x256xf32> to vector<1x256xf32>
    %9 = vector.broadcast %7 : vector<16x1xf32> to vector<16x256xf32>
    %10 = vector.broadcast %8 : vector<1x256xf32> to vector<16x256xf32>
    %11 = arith.mulf %9, %10 : vector<16x256xf32>
    %12 = arith.addf %6, %11 : vector<16x256xf32>
    %13 = vector.extract_strided_slice %1 {offsets = [0, 2], sizes = [16, 1], strides = [1, 1]} : vector<16x4xf32> to vector<16x1xf32>
    %14 = vector.extract_strided_slice %0 {offsets = [2, 0], sizes = [1, 256], strides = [1, 1]} : vector<4x256xf32> to vector<1x256xf32>
    %15 = vector.broadcast %13 : vector<16x1xf32> to vector<16x256xf32>
    %16 = vector.broadcast %14 : vector<1x256xf32> to vector<16x256xf32>
    %17 = arith.mulf %15, %16 : vector<16x256xf32>
    %18 = arith.addf %12, %17 : vector<16x256xf32>
    %19 = vector.extract_strided_slice %1 {offsets = [0, 3], sizes = [16, 1], strides = [1, 1]} : vector<16x4xf32> to vector<16x1xf32>
    %20 = vector.extract_strided_slice %0 {offsets = [3, 0], sizes = [1, 256], strides = [1, 1]} : vector<4x256xf32> to vector<1x256xf32>
    %21 = vector.broadcast %19 : vector<16x1xf32> to vector<16x256xf32>
    %22 = vector.broadcast %20 : vector<1x256xf32> to vector<16x256xf32>
    %23 = arith.mulf %21, %22 : vector<16x256xf32>
    %24 = arith.addf %18, %23 : vector<16x256xf32>
    %c0_3 = arith.constant 0 : index
    %c0_4 = arith.constant 0 : index
    %25 = vector.load %arg4[%c0_3, %c0_4] : memref<16x1xf32, #tpu.memory_space<vmem>>, vector<16x1xf32>
    %26 = vector.broadcast %25 : vector<16x1xf32> to vector<16x256xf32>
    %27 = arith.addf %24, %26 : vector<16x256xf32>
    %cst = arith.constant 5.000000e-01 : f32
    %28 = vector.broadcast %cst : f32 to vector<16x256xf32>
    %29 = arith.mulf %28, %27 : vector<16x256xf32>
    %30 = math.tanh %29 : vector<16x256xf32>
    %cst_5 = arith.constant 1.000000e+00 : f32
    %31 = vector.broadcast %cst_5 : f32 to vector<16x256xf32>
    %32 = arith.addf %30, %31 : vector<16x256xf32>
    %cst_6 = arith.constant 5.000000e-01 : f32
    %33 = vector.broadcast %cst_6 : f32 to vector<16x256xf32>
    %34 = arith.mulf %33, %32 : vector<16x256xf32>
    %35 = arith.mulf %27, %34 : vector<16x256xf32>
    %c0_7 = arith.constant 0 : index
    %c0_8 = arith.constant 0 : index
    %c0_9 = arith.constant 0 : index
    %36 = vector.load %arg5[%c0_7, %c0_8, %c0_9] : memref<9x16x1xf32, #tpu.memory_space<vmem>>, vector<9x16x1xf32>
    %c0_10 = arith.constant 0 : index
    %c0_11 = arith.constant 0 : index
    %c0_12 = arith.constant 0 : index
    %37 = vector.load %arg2[%c0_10, %c0_11, %c0_12] : memref<9x1x256xf32, #tpu.memory_space<vmem>>, vector<9x1x256xf32>
    %cst_13 = arith.constant 0.000000e+00 : f32
    %38 = vector.broadcast %cst_13 : f32 to vector<16x256xf32>
    %c17_i32 = arith.constant 17 : i32
    %39 = tpu.dynamic_rotate %35 by %c17_i32 dim 1 : vector<16x256xf32>, i32 -> vector<16x256xf32>
    %40 = vector.extract_strided_slice %37 {offsets = [0, 0, 0], sizes = [1, 1, 256], strides = [1, 1, 1]} : vector<9x1x256xf32> to vector<1x1x256xf32>
    %41 = vector.shape_cast %40 : vector<1x1x256xf32> to vector<1x256xf32>
    %42 = vector.broadcast %41 : vector<1x256xf32> to vector<16x256xf32>
    %43 = arith.mulf %39, %42 : vector<16x256xf32>
    %44 = vector.extract_strided_slice %36 {offsets = [0, 0, 0], sizes = [1, 16, 1], strides = [1, 1, 1]} : vector<9x16x1xf32> to vector<1x16x1xf32>
    %45 = vector.shape_cast %44 : vector<1x16x1xf32> to vector<16x1xf32>
    %46 = vector.broadcast %45 : vector<16x1xf32> to vector<16x256xf32>
    %47 = arith.mulf %43, %46 : vector<16x256xf32>
    %48 = arith.addf %38, %47 : vector<16x256xf32>
    %c16_i32 = arith.constant 16 : i32
    %49 = tpu.dynamic_rotate %35 by %c16_i32 dim 1 : vector<16x256xf32>, i32 -> vector<16x256xf32>
    %50 = vector.extract_strided_slice %37 {offsets = [1, 0, 0], sizes = [1, 1, 256], strides = [1, 1, 1]} : vector<9x1x256xf32> to vector<1x1x256xf32>
    %51 = vector.shape_cast %50 : vector<1x1x256xf32> to vector<1x256xf32>
    %52 = vector.broadcast %51 : vector<1x256xf32> to vector<16x256xf32>
    %53 = arith.mulf %49, %52 : vector<16x256xf32>
    %54 = vector.extract_strided_slice %36 {offsets = [1, 0, 0], sizes = [1, 16, 1], strides = [1, 1, 1]} : vector<9x16x1xf32> to vector<1x16x1xf32>
    %55 = vector.shape_cast %54 : vector<1x16x1xf32> to vector<16x1xf32>
    %56 = vector.broadcast %55 : vector<16x1xf32> to vector<16x256xf32>
    %57 = arith.mulf %53, %56 : vector<16x256xf32>
    %58 = arith.addf %48, %57 : vector<16x256xf32>
    %c15_i32 = arith.constant 15 : i32
    %59 = tpu.dynamic_rotate %35 by %c15_i32 dim 1 : vector<16x256xf32>, i32 -> vector<16x256xf32>
    %60 = vector.extract_strided_slice %37 {offsets = [2, 0, 0], sizes = [1, 1, 256], strides = [1, 1, 1]} : vector<9x1x256xf32> to vector<1x1x256xf32>
    %61 = vector.shape_cast %60 : vector<1x1x256xf32> to vector<1x256xf32>
    %62 = vector.broadcast %61 : vector<1x256xf32> to vector<16x256xf32>
    %63 = arith.mulf %59, %62 : vector<16x256xf32>
    %64 = vector.extract_strided_slice %36 {offsets = [2, 0, 0], sizes = [1, 16, 1], strides = [1, 1, 1]} : vector<9x16x1xf32> to vector<1x16x1xf32>
    %65 = vector.shape_cast %64 : vector<1x16x1xf32> to vector<16x1xf32>
    %66 = vector.broadcast %65 : vector<16x1xf32> to vector<16x256xf32>
    %67 = arith.mulf %63, %66 : vector<16x256xf32>
    %68 = arith.addf %58, %67 : vector<16x256xf32>
    %c1_i32 = arith.constant 1 : i32
    %69 = tpu.dynamic_rotate %35 by %c1_i32 dim 1 : vector<16x256xf32>, i32 -> vector<16x256xf32>
    %70 = vector.extract_strided_slice %37 {offsets = [3, 0, 0], sizes = [1, 1, 256], strides = [1, 1, 1]} : vector<9x1x256xf32> to vector<1x1x256xf32>
    %71 = vector.shape_cast %70 : vector<1x1x256xf32> to vector<1x256xf32>
    %72 = vector.broadcast %71 : vector<1x256xf32> to vector<16x256xf32>
    %73 = arith.mulf %69, %72 : vector<16x256xf32>
    %74 = vector.extract_strided_slice %36 {offsets = [3, 0, 0], sizes = [1, 16, 1], strides = [1, 1, 1]} : vector<9x16x1xf32> to vector<1x16x1xf32>
    %75 = vector.shape_cast %74 : vector<1x16x1xf32> to vector<16x1xf32>
    %76 = vector.broadcast %75 : vector<16x1xf32> to vector<16x256xf32>
    %77 = arith.mulf %73, %76 : vector<16x256xf32>
    %78 = arith.addf %68, %77 : vector<16x256xf32>
    %79 = vector.extract_strided_slice %36 {offsets = [4, 0, 0], sizes = [1, 16, 1], strides = [1, 1, 1]} : vector<9x16x1xf32> to vector<1x16x1xf32>
    %80 = vector.shape_cast %79 : vector<1x16x1xf32> to vector<16x1xf32>
    %81 = vector.broadcast %80 : vector<16x1xf32> to vector<16x256xf32>
    %82 = arith.mulf %35, %81 : vector<16x256xf32>
    %83 = arith.addf %78, %82 : vector<16x256xf32>
    %c255_i32 = arith.constant 255 : i32
    %84 = tpu.dynamic_rotate %35 by %c255_i32 dim 1 : vector<16x256xf32>, i32 -> vector<16x256xf32>
    %85 = vector.extract_strided_slice %37 {offsets = [5, 0, 0], sizes = [1, 1, 256], strides = [1, 1, 1]} : vector<9x1x256xf32> to vector<1x1x256xf32>
    %86 = vector.shape_cast %85 : vector<1x1x256xf32> to vector<1x256xf32>
    %87 = vector.broadcast %86 : vector<1x256xf32> to vector<16x256xf32>
    %88 = arith.mulf %84, %87 : vector<16x256xf32>
    %89 = vector.extract_strided_slice %36 {offsets = [5, 0, 0], sizes = [1, 16, 1], strides = [1, 1, 1]} : vector<9x16x1xf32> to vector<1x16x1xf32>
    %90 = vector.shape_cast %89 : vector<1x16x1xf32> to vector<16x1xf32>
    %91 = vector.broadcast %90 : vector<16x1xf32> to vector<16x256xf32>
    %92 = arith.mulf %88, %91 : vector<16x256xf32>
    %93 = arith.addf %83, %92 : vector<16x256xf32>
    %c241_i32 = arith.constant 241 : i32
    %94 = tpu.dynamic_rotate %35 by %c241_i32 dim 1 : vector<16x256xf32>, i32 -> vector<16x256xf32>
    %95 = vector.extract_strided_slice %37 {offsets = [6, 0, 0], sizes = [1, 1, 256], strides = [1, 1, 1]} : vector<9x1x256xf32> to vector<1x1x256xf32>
    %96 = vector.shape_cast %95 : vector<1x1x256xf32> to vector<1x256xf32>
    %97 = vector.broadcast %96 : vector<1x256xf32> to vector<16x256xf32>
    %98 = arith.mulf %94, %97 : vector<16x256xf32>
    %99 = vector.extract_strided_slice %36 {offsets = [6, 0, 0], sizes = [1, 16, 1], strides = [1, 1, 1]} : vector<9x16x1xf32> to vector<1x16x1xf32>
    %100 = vector.shape_cast %99 : vector<1x16x1xf32> to vector<16x1xf32>
    %101 = vector.broadcast %100 : vector<16x1xf32> to vector<16x256xf32>
    %102 = arith.mulf %98, %101 : vector<16x256xf32>
    %103 = arith.addf %93, %102 : vector<16x256xf32>
    %c240_i32 = arith.constant 240 : i32
    %104 = tpu.dynamic_rotate %35 by %c240_i32 dim 1 : vector<16x256xf32>, i32 -> vector<16x256xf32>
    %105 = vector.extract_strided_slice %37 {offsets = [7, 0, 0], sizes = [1, 1, 256], strides = [1, 1, 1]} : vector<9x1x256xf32> to vector<1x1x256xf32>
    %106 = vector.shape_cast %105 : vector<1x1x256xf32> to vector<1x256xf32>
    %107 = vector.broadcast %106 : vector<1x256xf32> to vector<16x256xf32>
    %108 = arith.mulf %104, %107 : vector<16x256xf32>
    %109 = vector.extract_strided_slice %36 {offsets = [7, 0, 0], sizes = [1, 16, 1], strides = [1, 1, 1]} : vector<9x16x1xf32> to vector<1x16x1xf32>
    %110 = vector.shape_cast %109 : vector<1x16x1xf32> to vector<16x1xf32>
    %111 = vector.broadcast %110 : vector<16x1xf32> to vector<16x256xf32>
    %112 = arith.mulf %108, %111 : vector<16x256xf32>
    %113 = arith.addf %103, %112 : vector<16x256xf32>
    %c239_i32 = arith.constant 239 : i32
    %114 = tpu.dynamic_rotate %35 by %c239_i32 dim 1 : vector<16x256xf32>, i32 -> vector<16x256xf32>
    %115 = vector.extract_strided_slice %37 {offsets = [8, 0, 0], sizes = [1, 1, 256], strides = [1, 1, 1]} : vector<9x1x256xf32> to vector<1x1x256xf32>
    %116 = vector.shape_cast %115 : vector<1x1x256xf32> to vector<1x256xf32>
    %117 = vector.broadcast %116 : vector<1x256xf32> to vector<16x256xf32>
    %118 = arith.mulf %114, %117 : vector<16x256xf32>
    %119 = vector.extract_strided_slice %36 {offsets = [8, 0, 0], sizes = [1, 16, 1], strides = [1, 1, 1]} : vector<9x16x1xf32> to vector<1x16x1xf32>
    %120 = vector.shape_cast %119 : vector<1x16x1xf32> to vector<16x1xf32>
    %121 = vector.broadcast %120 : vector<16x1xf32> to vector<16x256xf32>
    %122 = arith.mulf %118, %121 : vector<16x256xf32>
    %123 = arith.addf %113, %122 : vector<16x256xf32>
    %c0_14 = arith.constant 0 : index
    %c0_15 = arith.constant 0 : index
    %124 = vector.load %arg6[%c0_14, %c0_15] : memref<16x1xf32, #tpu.memory_space<vmem>>, vector<16x1xf32>
    %125 = vector.broadcast %124 : vector<16x1xf32> to vector<16x256xf32>
    %126 = arith.addf %123, %125 : vector<16x256xf32>
    %cst_16 = arith.constant 5.000000e-01 : f32
    %127 = vector.broadcast %cst_16 : f32 to vector<16x256xf32>
    %128 = arith.mulf %127, %126 : vector<16x256xf32>
    %129 = math.tanh %128 : vector<16x256xf32>
    %cst_17 = arith.constant 1.000000e+00 : f32
    %130 = vector.broadcast %cst_17 : f32 to vector<16x256xf32>
    %131 = arith.addf %129, %130 : vector<16x256xf32>
    %cst_18 = arith.constant 5.000000e-01 : f32
    %132 = vector.broadcast %cst_18 : f32 to vector<16x256xf32>
    %133 = arith.mulf %132, %131 : vector<16x256xf32>
    %134 = arith.mulf %126, %133 : vector<16x256xf32>
    %c0_19 = arith.constant 0 : index
    %c0_20 = arith.constant 0 : index
    %135 = vector.load %arg7[%c0_19, %c0_20] : memref<16x1xf32, #tpu.memory_space<vmem>>, vector<16x1xf32>
    %c0_21 = arith.constant 0 : index
    %c0_22 = arith.constant 0 : index
    %136 = vector.load %arg8[%c0_21, %c0_22] : memref<1x1xf32, #tpu.memory_space<vmem>>, vector<1x1xf32>
    %c0_23 = arith.constant 0 : index
    %c0_24 = arith.constant 0 : index
    %137 = vector.load %arg9[%c0_23, %c0_24] : memref<16x1xf32, #tpu.memory_space<vmem>>, vector<16x1xf32>
    %c0_25 = arith.constant 0 : index
    %c0_26 = arith.constant 0 : index
    %138 = vector.load %arg10[%c0_25, %c0_26] : memref<16x1xf32, #tpu.memory_space<vmem>>, vector<16x1xf32>
    %cst_27 = arith.constant dense<0.000000e+00> : vector<16xf32>
    %139 = vector.multi_reduction <add>, %134, %cst_27 [1] : vector<16x256xf32> to vector<16xf32>
    %140 = vector.shape_cast %139 : vector<16xf32> to vector<16x1xf32>
    %cst_28 = arith.constant 2.560000e+02 : f32
    %141 = vector.broadcast %cst_28 : f32 to vector<16x1xf32>
    %142 = arith.divf %140, %141 : vector<16x1xf32>
    %143 = arith.mulf %135, %142 : vector<16x1xf32>
    %cst_29 = arith.constant dense<0.000000e+00> : vector<1xf32>
    %144 = vector.multi_reduction <add>, %143, %cst_29 [0] : vector<16x1xf32> to vector<1xf32>
    %145 = vector.shape_cast %144 : vector<1xf32> to vector<1x1xf32>
    %146 = arith.addf %145, %136 : vector<1x1xf32>
    %cst_30 = arith.constant 5.000000e-01 : f32
    %147 = vector.broadcast %cst_30 : f32 to vector<1x1xf32>
    %148 = arith.mulf %147, %146 : vector<1x1xf32>
    %149 = math.tanh %148 : vector<1x1xf32>
    %cst_31 = arith.constant 1.000000e+00 : f32
    %150 = vector.broadcast %cst_31 : f32 to vector<1x1xf32>
    %151 = arith.addf %149, %150 : vector<1x1xf32>
    %cst_32 = arith.constant 5.000000e-01 : f32
    %152 = vector.broadcast %cst_32 : f32 to vector<1x1xf32>
    %153 = arith.mulf %152, %151 : vector<1x1xf32>
    %154 = arith.mulf %146, %153 : vector<1x1xf32>
    %155 = vector.broadcast %154 : vector<1x1xf32> to vector<16x1xf32>
    %156 = arith.mulf %137, %155 : vector<16x1xf32>
    %cst_33 = arith.constant dense<0.000000e+00> : vector<16xf32>
    %157 = vector.multi_reduction <add>, %156, %cst_33 [1] : vector<16x1xf32> to vector<16xf32>
    %158 = vector.shape_cast %157 : vector<16xf32> to vector<16x1xf32>
    %159 = arith.addf %158, %138 : vector<16x1xf32>
    %cst_34 = arith.constant 5.000000e-01 : f32
    %160 = vector.broadcast %cst_34 : f32 to vector<16x1xf32>
    %161 = arith.mulf %160, %159 : vector<16x1xf32>
    %162 = math.tanh %161 : vector<16x1xf32>
    %cst_35 = arith.constant 1.000000e+00 : f32
    %163 = vector.broadcast %cst_35 : f32 to vector<16x1xf32>
    %164 = arith.addf %162, %163 : vector<16x1xf32>
    %cst_36 = arith.constant 5.000000e-01 : f32
    %165 = vector.broadcast %cst_36 : f32 to vector<16x1xf32>
    %166 = arith.mulf %165, %164 : vector<16x1xf32>
    %167 = vector.broadcast %166 : vector<16x1xf32> to vector<16x256xf32>
    %168 = arith.mulf %134, %167 : vector<16x256xf32>
    %c0_37 = arith.constant 0 : index
    %c0_38 = arith.constant 0 : index
    %169 = vector.load %arg11[%c0_37, %c0_38] : memref<4x16xf32, #tpu.memory_space<vmem>>, vector<4x16xf32>
    %170 = vector.extract_strided_slice %169 {offsets = [0, 0], sizes = [4, 1], strides = [1, 1]} : vector<4x16xf32> to vector<4x1xf32>
    %171 = vector.extract_strided_slice %168 {offsets = [0, 0], sizes = [1, 256], strides = [1, 1]} : vector<16x256xf32> to vector<1x256xf32>
    %172 = vector.broadcast %170 : vector<4x1xf32> to vector<4x256xf32>
    %173 = vector.broadcast %171 : vector<1x256xf32> to vector<4x256xf32>
    %174 = arith.mulf %172, %173 : vector<4x256xf32>
    %175 = vector.extract_strided_slice %169 {offsets = [0, 1], sizes = [4, 1], strides = [1, 1]} : vector<4x16xf32> to vector<4x1xf32>
    %176 = vector.extract_strided_slice %168 {offsets = [1, 0], sizes = [1, 256], strides = [1, 1]} : vector<16x256xf32> to vector<1x256xf32>
    %177 = vector.broadcast %175 : vector<4x1xf32> to vector<4x256xf32>
    %178 = vector.broadcast %176 : vector<1x256xf32> to vector<4x256xf32>
    %179 = arith.mulf %177, %178 : vector<4x256xf32>
    %180 = arith.addf %174, %179 : vector<4x256xf32>
    %181 = vector.extract_strided_slice %169 {offsets = [0, 2], sizes = [4, 1], strides = [1, 1]} : vector<4x16xf32> to vector<4x1xf32>
    %182 = vector.extract_strided_slice %168 {offsets = [2, 0], sizes = [1, 256], strides = [1, 1]} : vector<16x256xf32> to vector<1x256xf32>
    %183 = vector.broadcast %181 : vector<4x1xf32> to vector<4x256xf32>
    %184 = vector.broadcast %182 : vector<1x256xf32> to vector<4x256xf32>
    %185 = arith.mulf %183, %184 : vector<4x256xf32>
    %186 = arith.addf %180, %185 : vector<4x256xf32>
    %187 = vector.extract_strided_slice %169 {offsets = [0, 3], sizes = [4, 1], strides = [1, 1]} : vector<4x16xf32> to vector<4x1xf32>
    %188 = vector.extract_strided_slice %168 {offsets = [3, 0], sizes = [1, 256], strides = [1, 1]} : vector<16x256xf32> to vector<1x256xf32>
    %189 = vector.broadcast %187 : vector<4x1xf32> to vector<4x256xf32>
    %190 = vector.broadcast %188 : vector<1x256xf32> to vector<4x256xf32>
    %191 = arith.mulf %189, %190 : vector<4x256xf32>
    %192 = arith.addf %186, %191 : vector<4x256xf32>
    %193 = vector.extract_strided_slice %169 {offsets = [0, 4], sizes = [4, 1], strides = [1, 1]} : vector<4x16xf32> to vector<4x1xf32>
    %194 = vector.extract_strided_slice %168 {offsets = [4, 0], sizes = [1, 256], strides = [1, 1]} : vector<16x256xf32> to vector<1x256xf32>
    %195 = vector.broadcast %193 : vector<4x1xf32> to vector<4x256xf32>
    %196 = vector.broadcast %194 : vector<1x256xf32> to vector<4x256xf32>
    %197 = arith.mulf %195, %196 : vector<4x256xf32>
    %198 = arith.addf %192, %197 : vector<4x256xf32>
    %199 = vector.extract_strided_slice %169 {offsets = [0, 5], sizes = [4, 1], strides = [1, 1]} : vector<4x16xf32> to vector<4x1xf32>
    %200 = vector.extract_strided_slice %168 {offsets = [5, 0], sizes = [1, 256], strides = [1, 1]} : vector<16x256xf32> to vector<1x256xf32>
    %201 = vector.broadcast %199 : vector<4x1xf32> to vector<4x256xf32>
    %202 = vector.broadcast %200 : vector<1x256xf32> to vector<4x256xf32>
    %203 = arith.mulf %201, %202 : vector<4x256xf32>
    %204 = arith.addf %198, %203 : vector<4x256xf32>
    %205 = vector.extract_strided_slice %169 {offsets = [0, 6], sizes = [4, 1], strides = [1, 1]} : vector<4x16xf32> to vector<4x1xf32>
    %206 = vector.extract_strided_slice %168 {offsets = [6, 0], sizes = [1, 256], strides = [1, 1]} : vector<16x256xf32> to vector<1x256xf32>
    %207 = vector.broadcast %205 : vector<4x1xf32> to vector<4x256xf32>
    %208 = vector.broadcast %206 : vector<1x256xf32> to vector<4x256xf32>
    %209 = arith.mulf %207, %208 : vector<4x256xf32>
    %210 = arith.addf %204, %209 : vector<4x256xf32>
    %211 = vector.extract_strided_slice %169 {offsets = [0, 7], sizes = [4, 1], strides = [1, 1]} : vector<4x16xf32> to vector<4x1xf32>
    %212 = vector.extract_strided_slice %168 {offsets = [7, 0], sizes = [1, 256], strides = [1, 1]} : vector<16x256xf32> to vector<1x256xf32>
    %213 = vector.broadcast %211 : vector<4x1xf32> to vector<4x256xf32>
    %214 = vector.broadcast %212 : vector<1x256xf32> to vector<4x256xf32>
    %215 = arith.mulf %213, %214 : vector<4x256xf32>
    %216 = arith.addf %210, %215 : vector<4x256xf32>
    %217 = vector.extract_strided_slice %169 {offsets = [0, 8], sizes = [4, 1], strides = [1, 1]} : vector<4x16xf32> to vector<4x1xf32>
    %218 = vector.extract_strided_slice %168 {offsets = [8, 0], sizes = [1, 256], strides = [1, 1]} : vector<16x256xf32> to vector<1x256xf32>
    %219 = vector.broadcast %217 : vector<4x1xf32> to vector<4x256xf32>
    %220 = vector.broadcast %218 : vector<1x256xf32> to vector<4x256xf32>
    %221 = arith.mulf %219, %220 : vector<4x256xf32>
    %222 = arith.addf %216, %221 : vector<4x256xf32>
    %223 = vector.extract_strided_slice %169 {offsets = [0, 9], sizes = [4, 1], strides = [1, 1]} : vector<4x16xf32> to vector<4x1xf32>
    %224 = vector.extract_strided_slice %168 {offsets = [9, 0], sizes = [1, 256], strides = [1, 1]} : vector<16x256xf32> to vector<1x256xf32>
    %225 = vector.broadcast %223 : vector<4x1xf32> to vector<4x256xf32>
    %226 = vector.broadcast %224 : vector<1x256xf32> to vector<4x256xf32>
    %227 = arith.mulf %225, %226 : vector<4x256xf32>
    %228 = arith.addf %222, %227 : vector<4x256xf32>
    %229 = vector.extract_strided_slice %169 {offsets = [0, 10], sizes = [4, 1], strides = [1, 1]} : vector<4x16xf32> to vector<4x1xf32>
    %230 = vector.extract_strided_slice %168 {offsets = [10, 0], sizes = [1, 256], strides = [1, 1]} : vector<16x256xf32> to vector<1x256xf32>
    %231 = vector.broadcast %229 : vector<4x1xf32> to vector<4x256xf32>
    %232 = vector.broadcast %230 : vector<1x256xf32> to vector<4x256xf32>
    %233 = arith.mulf %231, %232 : vector<4x256xf32>
    %234 = arith.addf %228, %233 : vector<4x256xf32>
    %235 = vector.extract_strided_slice %169 {offsets = [0, 11], sizes = [4, 1], strides = [1, 1]} : vector<4x16xf32> to vector<4x1xf32>
    %236 = vector.extract_strided_slice %168 {offsets = [11, 0], sizes = [1, 256], strides = [1, 1]} : vector<16x256xf32> to vector<1x256xf32>
    %237 = vector.broadcast %235 : vector<4x1xf32> to vector<4x256xf32>
    %238 = vector.broadcast %236 : vector<1x256xf32> to vector<4x256xf32>
    %239 = arith.mulf %237, %238 : vector<4x256xf32>
    %240 = arith.addf %234, %239 : vector<4x256xf32>
    %241 = vector.extract_strided_slice %169 {offsets = [0, 12], sizes = [4, 1], strides = [1, 1]} : vector<4x16xf32> to vector<4x1xf32>
    %242 = vector.extract_strided_slice %168 {offsets = [12, 0], sizes = [1, 256], strides = [1, 1]} : vector<16x256xf32> to vector<1x256xf32>
    %243 = vector.broadcast %241 : vector<4x1xf32> to vector<4x256xf32>
    %244 = vector.broadcast %242 : vector<1x256xf32> to vector<4x256xf32>
    %245 = arith.mulf %243, %244 : vector<4x256xf32>
    %246 = arith.addf %240, %245 : vector<4x256xf32>
    %247 = vector.extract_strided_slice %169 {offsets = [0, 13], sizes = [4, 1], strides = [1, 1]} : vector<4x16xf32> to vector<4x1xf32>
    %248 = vector.extract_strided_slice %168 {offsets = [13, 0], sizes = [1, 256], strides = [1, 1]} : vector<16x256xf32> to vector<1x256xf32>
    %249 = vector.broadcast %247 : vector<4x1xf32> to vector<4x256xf32>
    %250 = vector.broadcast %248 : vector<1x256xf32> to vector<4x256xf32>
    %251 = arith.mulf %249, %250 : vector<4x256xf32>
    %252 = arith.addf %246, %251 : vector<4x256xf32>
    %253 = vector.extract_strided_slice %169 {offsets = [0, 14], sizes = [4, 1], strides = [1, 1]} : vector<4x16xf32> to vector<4x1xf32>
    %254 = vector.extract_strided_slice %168 {offsets = [14, 0], sizes = [1, 256], strides = [1, 1]} : vector<16x256xf32> to vector<1x256xf32>
    %255 = vector.broadcast %253 : vector<4x1xf32> to vector<4x256xf32>
    %256 = vector.broadcast %254 : vector<1x256xf32> to vector<4x256xf32>
    %257 = arith.mulf %255, %256 : vector<4x256xf32>
    %258 = arith.addf %252, %257 : vector<4x256xf32>
    %259 = vector.extract_strided_slice %169 {offsets = [0, 15], sizes = [4, 1], strides = [1, 1]} : vector<4x16xf32> to vector<4x1xf32>
    %260 = vector.extract_strided_slice %168 {offsets = [15, 0], sizes = [1, 256], strides = [1, 1]} : vector<16x256xf32> to vector<1x256xf32>
    %261 = vector.broadcast %259 : vector<4x1xf32> to vector<4x256xf32>
    %262 = vector.broadcast %260 : vector<1x256xf32> to vector<4x256xf32>
    %263 = arith.mulf %261, %262 : vector<4x256xf32>
    %264 = arith.addf %258, %263 : vector<4x256xf32>
    %c0_39 = arith.constant 0 : index
    %c0_40 = arith.constant 0 : index
    %265 = vector.load %arg12[%c0_39, %c0_40] : memref<4x1xf32, #tpu.memory_space<vmem>>, vector<4x1xf32>
    %266 = vector.broadcast %265 : vector<4x1xf32> to vector<4x256xf32>
    %267 = arith.addf %264, %266 : vector<4x256xf32>
    %268 = arith.addf %267, %0 : vector<4x256xf32>
    %c0_41 = arith.constant 0 : index
    %c0_42 = arith.constant 0 : index
    %269 = vector.load %arg13[%c0_41, %c0_42] : memref<4x256xf32, #tpu.memory_space<vmem>>, vector<4x256xf32>
    tpu.vector_store %arg13[%c0_41, %c0_42], %268 {strides = array<i32>} : memref<4x256xf32, #tpu.memory_space<vmem>>, vector<4x256xf32>,
    return
  }
  func.func @transform_0(%arg0: i32) -> (i32, i32) {
    %c0_i32 = arith.constant 0 : i32
    %c0_i32_0 = arith.constant 0 : i32
    return %c0_i32, %arg0 : i32, i32
  }
  func.func @transform_1(%arg0: i32) -> (i32, i32, i32) {
    %c0_i32 = arith.constant 0 : i32
    %c0_i32_0 = arith.constant 0 : i32
    %c0_i32_1 = arith.constant 0 : i32
    %c0_i32_2 = arith.constant 0 : i32
    return %c0_i32, %c0_i32_0, %c0_i32_1 : i32, i32, i32
  }
  func.func @transform_2(%arg0: i32) -> (i32, i32) {
    %c0_i32 = arith.constant 0 : i32
    %c0_i32_0 = arith.constant 0 : i32
    %c0_i32_1 = arith.constant 0 : i32
    return %c0_i32, %c0_i32_0 : i32, i32
  }
  func.func @transform_3(%arg0: i32) -> (i32, i32) {
    %c0_i32 = arith.constant 0 : i32
    %c0_i32_0 = arith.constant 0 : i32
    %c0_i32_1 = arith.constant 0 : i32
    return %c0_i32, %c0_i32_0 : i32, i32
  }
  func.func @transform_4(%arg0: i32) -> (i32, i32, i32) {
    %c0_i32 = arith.constant 0 : i32
    %c0_i32_0 = arith.constant 0 : i32
    %c0_i32_1 = arith.constant 0 : i32
    %c0_i32_2 = arith.constant 0 : i32
    return %c0_i32, %c0_i32_0, %c0_i32_1 : i32, i32, i32
  }
  func.func @transform_5(%arg0: i32) -> (i32, i32) {
    %c0_i32 = arith.constant 0 : i32
    %c0_i32_0 = arith.constant 0 : i32
    %c0_i32_1 = arith.constant 0 : i32
    return %c0_i32, %c0_i32_0 : i32, i32
  }
  func.func @transform_6(%arg0: i32) -> (i32, i32) {
    %c0_i32 = arith.constant 0 : i32
    %c0_i32_0 = arith.constant 0 : i32
    %c0_i32_1 = arith.constant 0 : i32
    return %c0_i32, %c0_i32_0 : i32, i32
  }
  func.func @transform_7(%arg0: i32) -> (i32, i32) {
    %c0_i32 = arith.constant 0 : i32
    %c0_i32_0 = arith.constant 0 : i32
    %c0_i32_1 = arith.constant 0 : i32
    return %c0_i32, %c0_i32_0 : i32, i32
  }
  func.func @transform_8(%arg0: i32) -> (i32, i32) {
    %c0_i32 = arith.constant 0 : i32
    %c0_i32_0 = arith.constant 0 : i32
    %c0_i32_1 = arith.constant 0 : i32
    return %c0_i32, %c0_i32_0 : i32, i32
  }
  func.func @transform_9(%arg0: i32) -> (i32, i32) {
    %c0_i32 = arith.constant 0 : i32
    %c0_i32_0 = arith.constant 0 : i32
    %c0_i32_1 = arith.constant 0 : i32
    return %c0_i32, %c0_i32_0 : i32, i32
  }
  func.func @transform_10(%arg0: i32) -> (i32, i32) {
    %c0_i32 = arith.constant 0 : i32
    %c0_i32_0 = arith.constant 0 : i32
    %c0_i32_1 = arith.constant 0 : i32
    return %c0_i32, %c0_i32_0 : i32, i32
  }
  func.func @transform_11(%arg0: i32) -> (i32, i32) {
    %c0_i32 = arith.constant 0 : i32
    %c0_i32_0 = arith.constant 0 : i32
    %c0_i32_1 = arith.constant 0 : i32
    return %c0_i32, %c0_i32_0 : i32, i32
  }
  func.func @transform_12(%arg0: i32) -> (i32, i32) {
    %c0_i32 = arith.constant 0 : i32
    %c0_i32_0 = arith.constant 0 : i32
    return %c0_i32, %arg0 : i32, i32
  }
}

</mosaic_0001>

<bundles_post_ra>
// kernel: tpu_custom_call.1
= control target key start
LH: loop header
LB: loop body
LE: loop exit
PB: predicated region body
PF: predicated region fallthrough
CT: control target
= control target key end

     0   :  { %s2309_s0 = inlined_call_operand.vmem [shape: f32[4,512], index: 0, kind: input, shape index: {}]   ;;  %s2310_s1 = inlined_call_operand.vmem [shape: f32[9,1,256], index: 1, kind: input, shape index: {}]   ;;  %s2311_s2 = inlined_call_operand.vmem [shape: f32[16,4], index: 2, kind: input, shape index: {}]   ;;  %s2312_s3 = inlined_call_operand.vmem [shape: f32[16,1], index: 3, kind: input, shape index: {}]   ;;  %s2313_s4 = inlined_call_operand.vmem [shape: f32[9,16,1], index: 4, kind: input, shape index: {}]   ;;  %s2314_s5 = inlined_call_operand.vmem [shape: f32[16,1], index: 5, kind: input, shape index: {}]   ;;  %s2315_s6 = inlined_call_operand.vmem [shape: f32[16,1], index: 6, kind: input, shape index: {}]   ;;  %s2316_s7 = inlined_call_operand.<no memory space> [shape: f32[1,1], index: 7, kind: input, shape index: {}]   ;;  %s2317_s8 = inlined_call_operand.vmem [shape: f32[16,1], index: 8, kind: input, shape index: {}]   ;;  %s2318_s9 = inlined_call_operand.vmem [shape: f32[16,1], index: 9, kind: input, shape index: {}]   ;;  %s2319_s10 = inlined_call_operand.vmem [shape: f32[4,16], index: 10, kind: input, shape index: {}]   ;;  %s2320_s11 = inlined_call_operand.vmem [shape: f32[4,1], index: 11, kind: input, shape index: {}]   ;;  %s2321_s12 = inlined_call_operand.hbm [shape: f32[4,512], index: 12, kind: output, shape index: {}]  }
   0x1   :  { %2342 = sst [smem:[#allocation16_spill]] %s2309_s0  ;;  %v17_v0 = vstv %s2316_s7 }
   0x2   :  { %18 = vst [vmem:[#allocation2] sm:$0x1] %v17_v0 }
   0x3   :  { %19 = vsyncpa [#allocation4], 0 }
   0x4   :  { %21 = vsyncpa [#allocation4 + $0x1], 0  ;;  %s1737_s23 = smov 0   ;;  %s1739_s24 = smov 0  }
   0x5   :  { %s1741_s25 = smov 0   ;;  %s1743_s26 = smov 0  }
   0x6 LB: > { %s1758_s7 = sadd.s32 4294967295, %s1642_s26   ;;  %s1454_s27 = sadd.s32 4294967294, %s1642_s26   ;;  %s1642_s26 = sphi %s1743_s26, %s2372_s26   ;;  %s1638_s25 = sphi %s1741_s25, %s2371_s25   ;;  %s1634_s24 = sphi %s1739_s24, %s2370_s24   ;;  %s1630_s23 = sphi %s1737_s23, %s2369_s23  }
   0x7   : > { %s1762_s28 = sadd.s32 1, %s1642_s26   ;;  %s291_s29 = sadd.s32 1, %s1638_s25 }
   0x8   : > { %s288_s30 = ssub.s32 %s1642_s26, %s1762_s28  ;;  %p301_p0 = scmp.ne.s32.totalorder %s1638_s25, %s1634_s24 }
   0x9   : > { %p289_p1 = scmp.eq.s32.totalorder %s288_s30, 0  ;;  %p302_p2 = scmp.eq.s32.totalorder %s1758_s7, 1 }
   0xa   : > { %p307_p3 = scmp.ne.s32.totalorder %s1634_s24, %s1630_s23  ;;  %p308_p4 = scmp.eq.s32.totalorder %s1454_s27, 1 }
   0xb   : > { %s1773_s13 = scalar_select %p289_p1, %s1638_s25, %s291_s29  }
   0xc   : > { %p1775_p5 = por %p302_p2, %p301_p0  ;;  %p1779_p6 = por %p308_p4, %p307_p3 }
   0xd   : > { %p1457_p7 = scmp.ge.s32.totalorder %s1642_s26, 1  ;;  %p368_p8 = scmp.lt.s32.totalorder %s1642_s26, 3 }
   0xf   : > { %p369_p9 = pnand %p1457_p7, %p368_p8 }
  0x11   : > { %372 = sbr.rel (%p369_p9) target bundleno = 804 (0x324), region = 68 }
  0x18   : > { %v418_v1 = vld [vmem:[%s2311_s2] sm:$0xff]  ;;  %v2325_v2 = vmov 1   ;;  %v2322_v3 = vmov 0   ;;  %v419_v4 = vld [vmem:[%s2311_s2 + $0x8] sm:$0xff]  ;;  %v1646_v5 = vmov 2   ;;  %v2324_v6 = vmov 3  }
  0x19   : > { %1531 = vset.pattern.permute.xlu1 %v2325_v2  ;;  %1530 = vset.pattern.permute.xlu0 %v2322_v3  ;;  %v555_v7 = vld [vmem:[%s2312_s3] sm:$0xff]  ;;  %v556_v9 = vld [vmem:[%s2312_s3 + $0x8] sm:$0xff]  ;;  %v594_v10 = vld [vmem:[%s2313_s4 + $0x18] sm:$0xff]  ;;  %s1459_s20 = sshll.u32 %s1758_s7, 1  ;;  %v431_v27 = vlaneseq  ;;  %s2345_s0 = sld [smem:[#allocation16_spill]]  ;;  %vm1059_vm8 = vcmask 7168  }
  0x1a   : > { %454 = vperm.xlu1 %1531, %v418_v1   ;;  %422 = vperm.xlu0 %1530, %v418_v1   ;;  %v591_v8 = vld [vmem:[%s2313_s4] sm:$0xff]  ;;  %v592_v11 = vld [vmem:[%s2313_s4 + $0x8] sm:$0xff]  ;;  %v593_v13 = vld [vmem:[%s2313_s4 + $0x10] sm:$0xff]  ;;  %p411_p10 = scmp.lt.s32.totalorder %s1459_s20, 3  ;;  %s1648_s30 = smov 17  }
  0x1b   : > { %v596_v12 = vld [vmem:[%s2313_s4 + $0x28] sm:$0xff]  ;;  %v598_v14 = vld [vmem:[%s2313_s4 + $0x38] sm:$0xff]  ;;  %v595_v15 = vld [vmem:[%s2313_s4 + $0x20] sm:$0xff]  ;;  %v432_v28 = vshrl.u32 %v431_v27, 7  ;;  %s1649_s16 = smov 16   ;;  %s1650_s17 = smov 15  }
  0x1c   : > { %v600_v16 = vld [vmem:[%s2313_s4 + $0x48] sm:$0xff]  ;;  %v597_v17 = vld [vmem:[%s2313_s4 + $0x30] sm:$0xff]  ;;  %v602_v18 = vld [vmem:[%s2313_s4 + $0x58] sm:$0xff]  ;;  %s2374_s20 = smov (!%p411_p10, %s1459_s20), 3  ;;  %s1651_s18 = smov 1  }
  0x1d   : > { %v599_v19 = vld [vmem:[%s2313_s4 + $0x40] sm:$0xff]  ;;  %v604_v20 = vld [vmem:[%s2313_s4 + $0x68] sm:$0xff]  ;;  %v601_v21 = vld [vmem:[%s2313_s4 + $0x50] sm:$0xff]  ;;  %s1460_s21 = sshll.u32 %s2374_s20, 2  ;;  %v1866_v29 = vsub.s32 1, %v432_v28  ;;  %v1868_v30 = vsub.s32 5, %v432_v28 }
  0x1e   : > { %458 = vperm.xlu1 %1531, %v419_v4   ;;  %427 = vperm.xlu0 %1530, %v419_v4   ;;  %v606_v22 = vld [vmem:[%s2313_s4 + $0x78] sm:$0xff]  ;;  %v603_v23 = vld [vmem:[%s2313_s4 + $0x60] sm:$0xff]  ;;  %v608_v24 = vld [vmem:[%s2313_s4 + $0x88] sm:$0xff]  ;;  %v1870_v31 = vsub.s32 0, %v432_v28  ;;  %v1872_v32 = vsub.s32 4, %v432_v28  ;;  %v1875_v34 = vsub.s32 2, %v432_v28 }
  0x1f   : > { %v605_v25 = vld [vmem:[%s2313_s4 + $0x70] sm:$0xff]  ;;  %v607_v26 = vld [vmem:[%s2313_s4 + $0x80] sm:$0xff]  ;;  %s1864_s29 = scalar_lea.vmem %s2345_s0, %s1460_s21  ;;  %2346 = vst [vmem:[#allocation6_spill] sm:$0xff] %v1868_v30  ;;  %v1877_v35 = vsub.s32 6, %v432_v28  ;;  %v1885_v44 = vsub.s32 3, %v432_v28  ;;  %v1887_v45 = vsub.s32 7, %v432_v28 }
  0x20   : > { %2347 = vst [vmem:[#allocation7_spill] sm:$0xff] %v1872_v32  ;;  %v417_v33 = vld [vmem:[%s1864_s29] sm:$0xff]  ;;  %2348 = vst [vmem:[#allocation8_spill] sm:$0xff] %v1875_v34  ;;  %s1652_s19 = smov 127   ;;  %s1653_s20 = smov 113  }
  0x21   : > { %2349 = vst [vmem:[#allocation9_spill] sm:$0xff] %v1877_v35  ;;  %v464_v38 = vrot.slane %v417_v33, %v1866_v29  ;;  %v468_v39 = vrot.slane %v417_v33, %v1868_v30  ;;  %v434_v40 = vrot.slane %v417_v33, %v1870_v31  ;;  %v438_v41 = vrot.slane %v417_v33, %v1872_v32  ;;  %s1654_s21 = smov 112   ;;  %s1655_s22 = smov 111  }
  0x22   : > { %1533 = vset.pattern.permute.xlu1 %v1646_v5  ;;  %1532 = vset.pattern.permute.xlu0 %v1646_v5  ;;  %v498_v42 = vrot.slane %v417_v33, %v1875_v34  ;;  %v502_v43 = vrot.slane %v417_v33, %v1877_v35  ;;  %2350 = vst [vmem:[#allocation10_spill] sm:$0xff] %v1885_v44  ;;  %2351 = vst [vmem:[#allocation11_spill] sm:$0xff] %v1887_v45  ;;  %s407_s27 = sand.u32 1, %s1634_s24  }
  0x23   : > { %492 = vperm.xlu1 %1533, %v419_v4   ;;  %488 = vperm.xlu0 %1532, %v418_v1   ;;  %v474_v48 = vrot.slane %v464_v38, %v1866_v29  ;;  %v478_v49 = vrot.slane %v468_v39, %v1866_v29  ;;  %v444_v50 = vrot.slane %v434_v40, %v1870_v31 }
  0x24   : > { %v448_v51 = vrot.slane %v438_v41, %v1870_v31  ;;  %v508_v52 = vrot.slane %v498_v42, %v1875_v34  ;;  %v512_v53 = vrot.slane %v502_v43, %v1875_v34  ;;  %v532_v54 = vrot.slane %v417_v33, %v1885_v44 }
  0x25   : > { %v536_v55 = vrot.slane %v417_v33, %v1887_v45 }
  0x26   : > { %v542_v0 = vrot.slane %v532_v54, %v1885_v44 }
  0x27   : > { %1534 = vset.pattern.permute.xlu1 %v2324_v6  ;;  %1535 = vset.pattern.permute.xlu0 %v2324_v6 }
  0x28   : > { %522 = vperm.xlu1 %1534, %v418_v1   ;;  %526 = vperm.xlu0 %1535, %v419_v4   ;;  %v546_v1 = vrot.slane %v536_v55, %v1885_v44 }
  0x2c   : > { %1536 = vset.pattern.permute.xlu1 %v2322_v3  ;;  %1537 = vset.pattern.permute.xlu0 %v2322_v3 }
  0x2d   : > { %559 = vperm.xlu1 %1536, %v555_v7   ;;  %649 = vperm.xlu0 %1537, %v591_v8  }
  0x31   : > { %564 = vperm.xlu1 %1536, %v556_v9   ;;  %700 = vperm.xlu0 %1537, %v594_v10  }
  0x35   : > { %654 = vperm.xlu1 %1536, %v592_v11   ;;  %746 = vperm.xlu0 %1537, %v596_v12  }
  0x39   : > { %695 = vperm.xlu1 %1536, %v593_v13   ;;  %792 = vperm.xlu0 %1537, %v598_v14  }
  0x3d   : > { %741 = vperm.xlu1 %1536, %v595_v15   ;;  %810 = vperm.xlu0 %1537, %v600_v16  }
  0x41   : > { %787 = vperm.xlu1 %1536, %v597_v17   ;;  %856 = vperm.xlu0 %1537, %v602_v18  }
  0x45   : > { %805 = vperm.xlu1 %1536, %v599_v19   ;;  %902 = vperm.xlu0 %1537, %v604_v20  }
  0x49   : > { %851 = vperm.xlu1 %1536, %v601_v21   ;;  %948 = vperm.xlu0 %1537, %v606_v22  }
  0x4d   : > { %897 = vperm.xlu1 %1536, %v603_v23   ;;  %994 = vperm.xlu0 %1537, %v608_v24  }
  0x51   : > { %943 = vperm.xlu1 %1536, %v605_v25  }
  0x55   : > { %989 = vperm.xlu1 %1536, %v607_v26  }
  0x99   : > { %v455_v36 = vpop.permute.xlu1 %454  ;;  %v423_v37 = vpop.permute.xlu0 %422 }
  0x9a   : > { %v479_v56 = vmul.f32 %v474_v48, %v455_v36  ;;  %v480_v57 = vmul.f32 %v478_v49, %v455_v36  ;;  %v449_v58 = vmul.f32 %v444_v50, %v423_v37  ;;  %v450_v59 = vmul.f32 %v448_v51, %v423_v37 }
  0x9c   : > { %v483_v4 = vadd.f32 %v479_v56, %v449_v58  ;;  %v484_v7 = vadd.f32 %v480_v57, %v450_v59 }
  0x9d   : > { %v459_v46 = vpop.permute.xlu1 %458  ;;  %v428_v47 = vpop.permute.xlu0 %427 }
  0x9e   : > { %v481_v8 = vmul.f32 %v474_v48, %v459_v46  ;;  %v482_v9 = vmul.f32 %v478_v49, %v459_v46  ;;  %v451_v10 = vmul.f32 %v444_v50, %v428_v47  ;;  %v452_v11 = vmul.f32 %v448_v51, %v428_v47 }
  0xa0   : > { %v485_v22 = vadd.f32 %v481_v8, %v451_v10  ;;  %v486_v23 = vadd.f32 %v482_v9, %v452_v11 }
  0xa2   : > { %v493_v60 = vpop.permute.xlu1 %492  ;;  %v489_v61 = vpop.permute.xlu0 %488 }
  0xa3   : > { %v513_v62 = vmul.f32 %v508_v52, %v489_v61  ;;  %v514_v63 = vmul.f32 %v512_v53, %v489_v61  ;;  %v515_v18 = vmul.f32 %v508_v52, %v493_v60  ;;  %v516_v19 = vmul.f32 %v512_v53, %v493_v60 }
  0xa5   : > { %v517_v13 = vadd.f32 %v513_v62, %v483_v4  ;;  %v518_v14 = vadd.f32 %v514_v63, %v484_v7  ;;  %v519_v33 = vadd.f32 %v515_v18, %v485_v22  ;;  %v520_v36 = vadd.f32 %v516_v19, %v486_v23  ;;  %v1005_v19 = vld [vmem:[%s2314_s5] sm:$0xff] }
  0xa7   : > { %v523_v12 = vpop.permute.xlu1 %522  ;;  %v527_v17 = vpop.permute.xlu0 %526 }
  0xa8   : > { %v547_v15 = vmul.f32 %v542_v0, %v523_v12  ;;  %v548_v16 = vmul.f32 %v546_v1, %v523_v12  ;;  %v549_v24 = vmul.f32 %v542_v0, %v527_v17  ;;  %v550_v25 = vmul.f32 %v546_v1, %v527_v17 }
  0xaa   : > { %v551_v20 = vadd.f32 %v547_v15, %v517_v13  ;;  %v552_v21 = vadd.f32 %v548_v16, %v518_v14  ;;  %v553_v41 = vadd.f32 %v549_v24, %v519_v33  ;;  %v554_v42 = vadd.f32 %v550_v25, %v520_v36 }
  0xac   : > { %v560_v26 = vpop.permute.xlu1 %559  ;;  %v1899_v28 = vpop.permute.xlu0 %649 }
  0xad   : > { %v567_v37 = vadd.f32 %v560_v26, %v551_v20  ;;  %v568_v38 = vadd.f32 %v560_v26, %v552_v21  ;;  %v1006_v20 = vld [vmem:[%s2314_s5 + $0x8] sm:$0xff] }
  0xaf   : > { %v571_v39 = vmul.f32 0.5, %v567_v37  ;;  %v572_v40 = vmul.f32 0.5, %v568_v38 }
  0xb0   : > { %v565_v43 = vpop.permute.xlu1 %564  ;;  %v1901_v48 = vpop.permute.xlu0 %700 }
  0xb1   : > { %1557 = vtanh.f32 %v571_v39  ;;  %v569_v46 = vadd.f32 %v565_v43, %v553_v41  ;;  %v570_v47 = vadd.f32 %v565_v43, %v554_v42 }
  0xb2   : > { %1559 = vtanh.f32 %v572_v40 }
  0xb3   : > { %v573_v49 = vmul.f32 0.5, %v569_v46  ;;  %v574_v50 = vmul.f32 0.5, %v570_v47 }
  0xb4   : > { %v1903_v51 = vpop.permute.xlu1 %654  ;;  %v1905_v52 = vpop.permute.xlu0 %746 }
  0xb5   : > { %1561 = vtanh.f32 %v573_v49 }
  0xb6   : > { %1563 = vtanh.f32 %v574_v50 }
  0xb8   : > { %v1907_v53 = vpop.permute.xlu1 %695  ;;  %v1911_v59 = vpop.permute.xlu0 %792 }
  0xbb   : > { %v1558_v54 = vpop.eup %1557 }
  0xbc   : > { %v1560_v55 = vpop.eup %1559  ;;  %v579_v56 = vadd.f32 1.0, %v1558_v54  ;;  %v1909_v57 = vpop.permute.xlu1 %741 }
  0xbd   : > { %v580_v58 = vadd.f32 1.0, %v1560_v55  ;;  %v811_v11 = vpop.permute.xlu0 %810  ;;  %v1947_v55 = vand.u32 127, %v431_v27  ;;  %v612_v27 = vld [vmem:[%s2310_s1 + $0x6] sm:$0x3] }
  0xbe   : > { %v583_v60 = vmul.f32 0.5, %v579_v56  ;;  %v609_v56 = vld [vmem:[%s2310_s1] sm:$0x3] }
  0xbf   : > { %v1562_v61 = vpop.eup %1561  ;;  %v584_v62 = vmul.f32 0.5, %v580_v58  ;;  %vm627_vm0 = vcmp.lt.s32.totalorder %v1947_v55, 17  ;;  %vm673_vm1 = vcmp.lt.s32.totalorder %v1947_v55, 16  ;;  %vm719_vm2 = vcmp.lt.s32.totalorder %v1947_v55, 15 }
  0xc0   : > { %v1564_v63 = vpop.eup %1563  ;;  %v587_v0 = vmul.f32 %v583_v60, %v567_v37  ;;  %v581_v1 = vadd.f32 1.0, %v1562_v61  ;;  %v1913_v4 = vpop.permute.xlu1 %787  ;;  %v610_v61 = vld [vmem:[%s2310_s1 + $0x2] sm:$0x3]  ;;  %vm765_vm3 = vcmp.lt.s32.totalorder %v1947_v55, 1  ;;  %vm829_vm4 = vcmp.lt.s32.totalorder %v1947_v55, 127 }
  0xc1   : > { %v582_v7 = vadd.f32 1.0, %v1564_v63  ;;  %v588_v9 = vmul.f32 %v584_v62, %v568_v38  ;;  %v1932_v22 = vpop.permute.xlu0 %856  ;;  %v611_v62 = vld [vmem:[%s2310_s1 + $0x4] sm:$0x3]  ;;  %v636_v63 = vrot.slane %v609_v56, %v1870_v31  ;;  %vm875_vm5 = vcmp.lt.s32.totalorder %v1947_v55, 113 }
  0xc2   : > { %v585_v8 = vmul.f32 0.5, %v581_v1  ;;  %617 = vrot.lane.b32.xlu1 %v587_v0, %s1648_s30  ;;  %v613_v1 = vld [vmem:[%s2310_s1 + $0xa] sm:$0x3]  ;;  %vm921_vm6 = vcmp.lt.s32.totalorder %v1947_v55, 112  ;;  %vm967_vm7 = vcmp.lt.s32.totalorder %v1947_v55, 111 }
  0xc3   : > { %v586_v10 = vmul.f32 0.5, %v582_v7  ;;  %v682_v7 = vrot.slane %v610_v61, %v1870_v31  ;;  %v1991_v3 = vrot.slane %v613_v1, %v1870_v31 }
  0xc4   : > { %v589_v12 = vmul.f32 %v585_v8, %v569_v46  ;;  %v806_v13 = vpop.permute.xlu1 %805  ;;  %v686_v8 = vrot.slane %v610_v61, %v1866_v29 }
  0xc5   : > { %v590_v14 = vmul.f32 %v586_v10, %v570_v47  ;;  %v1915_v15 = vmul.f32 %v806_v13, %v587_v0  ;;  %v1917_v16 = vmul.f32 %v806_v13, %v588_v9  ;;  %v1936_v24 = vpop.permute.xlu0 %902  ;;  %v732_v13 = vrot.slane %v611_v62, %v1866_v29 }
  0xc6   : > { %v1919_v17 = vmul.f32 %v811_v11, %v589_v12  ;;  %619 = vrot.lane.b32.xlu0 %v589_v12, %s1648_s30  ;;  %621 = vrot.lane.b32.xlu1 %v588_v9, %s1648_s30  ;;  %2352 = vst [vmem:[#allocation12_spill] sm:$0xff] %v1936_v24 }
  0xc7   : > { %v1921_v18 = vmul.f32 %v811_v11, %v590_v14 }
  0xc8   : > { %v1930_v21 = vpop.permute.xlu1 %851 }
  0xc9   : > { %v1940_v26 = vpop.permute.xlu0 %948 }
  0xca   : > { %623 = vrot.lane.b32.xlu0 %v590_v14, %s1648_s30  ;;  %665 = vrot.lane.b32.xlu1 %v587_v0, %s1649_s16  ;;  %2353 = vst [vmem:[#allocation13_spill] sm:$0xff] %v1940_v26  ;;  %s1458_s30 = sshll.u32 %s407_s27, 3 }
  0xcc   : > { %v1934_v23 = vpop.permute.xlu1 %897 }
  0xcd   : > { %v1944_v36 = vpop.permute.xlu0 %994 }
  0xce   : > { %667 = vrot.lane.b32.xlu0 %v589_v12, %s1649_s16  ;;  %669 = vrot.lane.b32.xlu1 %v588_v9, %s1649_s16  ;;  %2355 = vst [vmem:[#allocation15_spill] sm:$0xff] %v1944_v36 }
  0xd0   : > { %v1938_v25 = vpop.permute.xlu1 %943 }
  0xd2   : > { %671 = vrot.lane.b32.xlu0 %v590_v14, %s1649_s16  ;;  %711 = vrot.lane.b32.xlu1 %v587_v0, %s1650_s17  ;;  %s1466_s16 = sshll.u32 %s1758_s7, 7  ;;  %s1668_s7 = smov [#allocation3]  }
  0xd4   : > { %v1942_v33 = vpop.permute.xlu1 %989 }
  0xd5   : > { %2354 = vst [vmem:[#allocation14_spill] sm:$0xff] %v1942_v33 }
  0xd6   : > { %713 = vrot.lane.b32.xlu0 %v589_v12, %s1650_s17  ;;  %715 = vrot.lane.b32.xlu1 %v588_v9, %s1650_s17 }
  0xda   : > { %717 = vrot.lane.b32.xlu0 %v590_v14, %s1650_s17  ;;  %757 = vrot.lane.b32.xlu1 %v587_v0, %s1651_s18  ;;  %s409_s17 = scalar_lea.vmem [#allocation3], %s1458_s30  ;;  %s1584_s30 = sshll.u32 %s1668_s7, 4  ;;  %s1585_s30 = int_to_ptr.vmem [resolvable:$false] %s1584_s30 }
  0xdb   : > { %s1586_s0 = scalar_lea.vmem %s1585_s30, 256 }
  0xde   : > { %759 = vrot.lane.b32.xlu0 %v589_v12, %s1651_s18  ;;  %761 = vrot.lane.b32.xlu1 %v588_v9, %s1651_s18 }
  0xe2   : > { %763 = vrot.lane.b32.xlu0 %v590_v14, %s1651_s18  ;;  %821 = vrot.lane.b32.xlu1 %v587_v0, %s1652_s19  ;;  %s1395_s18 = sshll.u32 %s409_s17, 4  ;;  %s2269_s18 = int_to_ptr.vmem [resolvable:$true] %s1395_s18 }
  0xe3   : > { %p1587_p0 = scmp.lt.s32.totalorder %s2269_s18, %s1585_s30 }
  0xe6   : > { %823 = vrot.lane.b32.xlu0 %v589_v12, %s1652_s19  ;;  %825 = vrot.lane.b32.xlu1 %v588_v9, %s1652_s19 }
  0xea   : > { %827 = vrot.lane.b32.xlu0 %v590_v14, %s1652_s19  ;;  %867 = vrot.lane.b32.xlu1 %v587_v0, %s1653_s20 }
  0xee   : > { %869 = vrot.lane.b32.xlu0 %v589_v12, %s1653_s20  ;;  %871 = vrot.lane.b32.xlu1 %v588_v9, %s1653_s20 }
  0xf2   : > { %873 = vrot.lane.b32.xlu0 %v590_v14, %s1653_s20  ;;  %913 = vrot.lane.b32.xlu1 %v587_v0, %s1654_s21 }
  0xf6   : > { %915 = vrot.lane.b32.xlu0 %v589_v12, %s1654_s21  ;;  %917 = vrot.lane.b32.xlu1 %v588_v9, %s1654_s21 }
  0xfa   : > { %919 = vrot.lane.b32.xlu0 %v590_v14, %s1654_s21  ;;  %959 = vrot.lane.b32.xlu1 %v587_v0, %s1655_s22  ;;  %v640_v0 = vrot.slane %v609_v56, %v1866_v29  ;;  %s2267_s21 = scalar_lea.hbm %s2321_s12, %s1466_s16 }
  0xfe   : > { %961 = vrot.lane.b32.xlu0 %v589_v12, %s1655_s22  ;;  %963 = vrot.lane.b32.xlu1 %v588_v9, %s1655_s22  ;;  %v728_v9 = vrot.slane %v611_v62, %v1870_v31  ;;  %v614_v12 = vld [vmem:[%s2310_s1 + $0xc] sm:$0x3]  ;;  %v1994_v62 = vrot.slane %v613_v1, %v1866_v29 }
  0xff   : > { %v2001_v2 = vrot.slane %v614_v12, %v1870_v31  ;;  %v2004_v45 = vrot.slane %v614_v12, %v1866_v29 }
 0x102   : > { %965 = vrot.lane.b32.xlu0 %v590_v14, %s1655_s22  ;;  %1009 = vperm.xlu1 %1536, %v1005_v19   ;;  %v774_v14 = vrot.slane %v612_v27, %v1870_v31  ;;  %v778_v19 = vrot.slane %v612_v27, %v1866_v29  ;;  %s1580_s22 = scalar_lea.vmem %s2269_s18, 128 }
 0x103   : > { %p1581_p11 = scmp.ne.s32.totalorder %s2269_s18, %s1580_s22  ;;  %p1588_p1 = scmp.lt.s32.totalorder %s1586_s0, %s1580_s22 }
 0x105   : > { %p1582_p12 = pnand %p1581_p11, %p1775_p5  ;;  %p1589_p2 = por %p1588_p1, %p1587_p0 }
 0x106   : > { %1014 = vperm.xlu0 %1537, %v1006_v20   ;;  %v615_v20 = vld [vmem:[%s2310_s1 + $0xe] sm:$0x3] }
 0x107   : > { %v2014_v30 = vrot.slane %v615_v20, %v1870_v31  ;;  %p1583_p13 = pneg %p1582_p12 }
 0x109   : > { %p1590_p3 = pnand %p1589_p2, %p1583_p13 }
 0x10a   : > { %1539 = vset.pattern.permute.xlu0 %v1646_v5 }
 0x134   : > { %v618_v37 = vpop.permute.xlu1 %617 }
 0x138   : > { %v620_v38 = vpop.permute.xlu0 %619  ;;  %v622_v39 = vpop.permute.xlu1 %621 }
 0x139   : > { %v628_v6 = vsel %vm627_vm0, %v618_v37, %v622_v39  ;;  %v630_v27 = vsel %vm627_vm0, %v622_v39, %v618_v37  ;;  %v2017_v37 = vrot.slane %v615_v20, %v1866_v29 }
 0x13c   : > { %v624_v5 = vpop.permute.xlu0 %623  ;;  %v666_v40 = vpop.permute.xlu1 %665 }
 0x13d   : > { %v629_v34 = vsel %vm627_vm0, %v620_v38, %v624_v5  ;;  %v631_v36 = vsel %vm627_vm0, %v624_v5, %v620_v38 }
 0x13e   : > { %v645_v5 = vmul.f32 %v636_v63, %v631_v36  ;;  %v646_v24 = vmul.f32 %v640_v0, %v629_v34 }
 0x140   : > { %v668_v41 = vpop.permute.xlu0 %667  ;;  %v670_v42 = vpop.permute.xlu1 %669 }
 0x141   : > { %v674_v56 = vsel %vm673_vm1, %v666_v40, %v670_v42  ;;  %v676_v61 = vsel %vm673_vm1, %v670_v42, %v666_v40 }
 0x142   : > { %v689_v39 = vmul.f32 %v682_v7, %v676_v61  ;;  %v690_v12 = vmul.f32 %v686_v8, %v674_v56 }
 0x144   : > { %v672_v43 = vpop.permute.xlu0 %671  ;;  %v712_v46 = vpop.permute.xlu1 %711 }
 0x145   : > { %v675_v40 = vsel %vm673_vm1, %v668_v41, %v672_v43  ;;  %v677_v42 = vsel %vm673_vm1, %v672_v43, %v668_v41  ;;  %v643_v41 = vmul.f32 %v636_v63, %v630_v27  ;;  %v644_v43 = vmul.f32 %v640_v0, %v628_v6 }
 0x146   : > { %v691_v20 = vmul.f32 %v682_v7, %v677_v42  ;;  %v692_v33 = vmul.f32 %v686_v8, %v675_v40  ;;  %v703_v7 = vmul.f32 %v1907_v53, %v689_v39  ;;  %v704_v8 = vmul.f32 %v1907_v53, %v690_v12 }
 0x147   : > { %v658_v34 = vmul.f32 %v1899_v28, %v644_v43 }
 0x148   : > { %v714_v47 = vpop.permute.xlu0 %713  ;;  %v716_v49 = vpop.permute.xlu1 %715  ;;  %v705_v53 = vmul.f32 %v1901_v48, %v691_v20 }
 0x149   : > { %v720_v32 = vsel %vm719_vm2, %v712_v46, %v716_v49  ;;  %v722_v44 = vsel %vm719_vm2, %v716_v49, %v712_v46 }
 0x14a   : > { %v735_v26 = vmul.f32 %v728_v9, %v722_v44  ;;  %v736_v46 = vmul.f32 %v732_v13, %v720_v32 }
 0x14c   : > { %v718_v50 = vpop.permute.xlu0 %717  ;;  %v758_v54 = vpop.permute.xlu1 %757  ;;  %v750_v63 = vmul.f32 %v1909_v57, %v736_v46 }
 0x14d   : > { %v721_v56 = vsel %vm719_vm2, %v714_v47, %v718_v50  ;;  %v723_v61 = vsel %vm719_vm2, %v718_v50, %v714_v47  ;;  %v657_v47 = vmul.f32 %v1899_v28, %v643_v41  ;;  %v708_v28 = vadd.f32 %v704_v8, %v658_v34 }
 0x14e   : > { %v737_v40 = vmul.f32 %v728_v9, %v723_v61  ;;  %v738_v42 = vmul.f32 %v732_v13, %v721_v56 }
 0x14f   : > { %v707_v12 = vadd.f32 %v703_v7, %v657_v47 }
 0x150   : > { %v1952_v58 = vpop.permute.xlu0 %759  ;;  %v762_v60 = vpop.permute.xlu1 %761  ;;  %v751_v41 = vmul.f32 %v1905_v52, %v737_v40  ;;  %v752_v43 = vmul.f32 %v1905_v52, %v738_v42  ;;  %v754_v52 = vadd.f32 %v750_v63, %v708_v28 }
 0x151   : > { %v766_v6 = vsel %vm765_vm3, %v758_v54, %v762_v60  ;;  %v768_v49 = vsel %vm765_vm3, %v762_v60, %v758_v54  ;;  %v706_v54 = vmul.f32 %v1901_v48, %v692_v33  ;;  %v749_v60 = vmul.f32 %v1909_v57, %v735_v26 }
 0x152   : > { %v781_v36 = vmul.f32 %v774_v14, %v768_v49  ;;  %v782_v50 = vmul.f32 %v778_v19, %v766_v6 }
 0x154   : > { %v764_v10 = vpop.permute.xlu0 %763  ;;  %v1974_v11 = vpop.permute.xlu1 %821  ;;  %v795_v48 = vmul.f32 %v1913_v4, %v781_v36  ;;  %v796_v26 = vmul.f32 %v1913_v4, %v782_v50 }
 0x155   : > { %v767_v32 = vsel %vm765_vm3, %v1952_v58, %v764_v10  ;;  %v769_v44 = vsel %vm765_vm3, %v764_v10, %v1952_v58  ;;  %v659_v58 = vmul.f32 %v1903_v51, %v645_v5  ;;  %v660_v10 = vmul.f32 %v1903_v51, %v646_v24  ;;  %v616_v24 = vld [vmem:[%s2310_s1 + $0x10] sm:$0x3] }
 0x156   : > { %v783_v13 = vmul.f32 %v774_v14, %v769_v44  ;;  %v784_v39 = vmul.f32 %v778_v19, %v767_v32  ;;  %v753_v19 = vadd.f32 %v749_v60, %v707_v12  ;;  %v2076_v49 = vrot.slane %v616_v24, %v1870_v31 }
 0x157   : > { %v709_v33 = vadd.f32 %v705_v53, %v659_v58  ;;  %v710_v14 = vadd.f32 %v706_v54, %v660_v10  ;;  %v2079_v5 = vrot.slane %v616_v24, %v1866_v29  ;;  %v800_v40 = vadd.f32 %v796_v26, %v754_v52 }
 0x158   : > { %v2010_v1 = vpop.permute.xlu0 %823  ;;  %v826_v35 = vpop.permute.xlu1 %825  ;;  %v797_v4 = vmul.f32 %v1911_v59, %v783_v13  ;;  %v798_v61 = vmul.f32 %v1911_v59, %v784_v39  ;;  %v799_v8 = vadd.f32 %v795_v48, %v753_v19 }
 0x159   : > { %v830_v57 = vsel %vm829_vm4, %v1974_v11, %v826_v35  ;;  %v832_v51 = vsel %vm829_vm4, %v826_v35, %v1974_v11  ;;  %v755_v7 = vadd.f32 %v751_v41, %v709_v33  ;;  %v756_v59 = vadd.f32 %v752_v43, %v710_v14 }
 0x15a   : > { %v845_v11 = vmul.f32 %v1991_v3, %v830_v57  ;;  %v846_v6 = vmul.f32 %v1994_v62, %v832_v51  ;;  %v818_v39 = vadd.f32 %v1917_v16, %v800_v40  ;;  %v817_v12 = vadd.f32 %v1915_v15, %v799_v8 }
 0x15b   : > { %v801_v36 = vadd.f32 %v797_v4, %v755_v7  ;;  %v802_v50 = vadd.f32 %v798_v61, %v756_v59  ;;  %v2358_v59 = vld [vmem:[#allocation14_spill] sm:$0xff] }
 0x15c   : > { %v828_v27 = vpop.permute.xlu0 %827  ;;  %v868_v38 = vpop.permute.xlu1 %867  ;;  %v859_v60 = vmul.f32 %v1930_v21, %v845_v11  ;;  %v860_v63 = vmul.f32 %v1930_v21, %v846_v6  ;;  %v2357_v11 = vld [vmem:[#allocation13_spill] sm:$0xff] }
 0x15d   : > { %v833_v42 = vsel %vm829_vm4, %v828_v27, %v2010_v1  ;;  %v820_v15 = vadd.f32 %v1921_v18, %v802_v50  ;;  %v819_v57 = vadd.f32 %v1919_v17, %v801_v36 }
 0x15e   : > { %v848_v58 = vmul.f32 %v1994_v62, %v833_v42  ;;  %v863_v26 = vadd.f32 %v859_v60, %v817_v12  ;;  %v864_v16 = vadd.f32 %v860_v63, %v818_v39 }
 0x160   : > { %v870_v0 = vpop.permute.xlu0 %869  ;;  %v872_v9 = vpop.permute.xlu1 %871  ;;  %v862_v51 = vmul.f32 %v1932_v22, %v848_v58 }
 0x161   : > { %v876_v46 = vsel %vm875_vm5, %v868_v38, %v872_v9  ;;  %v878_v35 = vsel %vm875_vm5, %v872_v9, %v868_v38  ;;  %v831_v38 = vsel %vm829_vm4, %v2010_v1, %v828_v27 }
 0x162   : > { %v891_v32 = vmul.f32 %v2001_v2, %v876_v46  ;;  %v892_v44 = vmul.f32 %v2004_v45, %v878_v35  ;;  %v847_v9 = vmul.f32 %v1991_v3, %v831_v38 }
 0x164   : > { %v874_v20 = vpop.permute.xlu0 %873  ;;  %v914_v56 = vpop.permute.xlu1 %913  ;;  %v905_v21 = vmul.f32 %v1934_v23, %v891_v32  ;;  %v906_v28 = vmul.f32 %v1934_v23, %v892_v44  ;;  %v861_v23 = vmul.f32 %v1932_v22, %v847_v9 }
 0x165   : > { %v877_v1 = vsel %vm875_vm5, %v870_v0, %v874_v20  ;;  %v879_v27 = vsel %vm875_vm5, %v874_v20, %v870_v0 }
 0x166   : > { %v893_v0 = vmul.f32 %v2001_v2, %v877_v1  ;;  %v894_v3 = vmul.f32 %v2004_v45, %v879_v27  ;;  %v909_v24 = vadd.f32 %v905_v21, %v863_v26  ;;  %v910_v33 = vadd.f32 %v906_v28, %v864_v16 }
 0x167   : > { %v865_v46 = vadd.f32 %v861_v23, %v819_v57 }
 0x168   : > { %v916_v47 = vpop.permute.xlu0 %915  ;;  %v918_v34 = vpop.permute.xlu1 %917 }
 0x169   : > { %v922_v53 = vsel %vm921_vm6, %v914_v56, %v918_v34  ;;  %v924_v54 = vsel %vm921_vm6, %v918_v34, %v914_v56  ;;  %v2356_v56 = vld [vmem:[#allocation12_spill] sm:$0xff] }
 0x16a   : > { %v937_v10 = vmul.f32 %v2014_v30, %v922_v53  ;;  %v938_v13 = vmul.f32 %v2017_v37, %v924_v54  ;;  %v907_v18 = vmul.f32 %v2356_v56, %v893_v0  ;;  %v908_v17 = vmul.f32 %v2356_v56, %v894_v3  ;;  %v2359_v54 = vld [vmem:[#allocation15_spill] sm:$0xff] }
 0x16b   : > { %v2360_v56 = vmov 1  }
 0x16c   : > { %v920_v41 = vpop.permute.xlu0 %919  ;;  %v960_v43 = vpop.permute.xlu1 %959  ;;  %v951_v2 = vmul.f32 %v1938_v25, %v937_v10  ;;  %v952_v45 = vmul.f32 %v1938_v25, %v938_v13  ;;  %v911_v42 = vadd.f32 %v907_v18, %v865_v46  ;;  %v2361_v18 = vmov 3  }
 0x16d   : > { %v923_v62 = vsel %vm921_vm6, %v916_v47, %v920_v41  ;;  %v925_v48 = vsel %vm921_vm6, %v920_v41, %v916_v47 }
 0x16e   : > { %v939_v14 = vmul.f32 %v2014_v30, %v923_v62  ;;  %v940_v19 = vmul.f32 %v2017_v37, %v925_v48  ;;  %v866_v30 = vadd.f32 %v862_v51, %v820_v15  ;;  %v956_v35 = vadd.f32 %v952_v45, %v910_v33 }
 0x16f   : > { %v955_v37 = vadd.f32 %v951_v2, %v909_v24 }
 0x170   : > { %v962_v52 = vpop.permute.xlu0 %961  ;;  %v964_v20 = vpop.permute.xlu1 %963  ;;  %v953_v6 = vmul.f32 %v2357_v11, %v939_v14  ;;  %v954_v7 = vmul.f32 %v2357_v11, %v940_v19  ;;  %v912_v32 = vadd.f32 %v908_v17, %v866_v30  ;;  %v2362_v17 = vmov 0   ;;  %v1041_v30 = vld [vmem:[%s2315_s6] sm:$0xff] }
 0x171   : > { %v968_v4 = vsel %vm967_vm7, %v960_v43, %v964_v20  ;;  %v970_v22 = vsel %vm967_vm7, %v964_v20, %v960_v43  ;;  %v2156_v20 = vld [vmem:[%s2319_s10] sm:$0xf] }
 0x172   : > { %v983_v25 = vmul.f32 %v2076_v49, %v968_v4  ;;  %v984_v61 = vmul.f32 %v2079_v5, %v970_v22  ;;  %v958_v1 = vadd.f32 %v954_v7, %v912_v32  ;;  %v957_v27 = vadd.f32 %v953_v6, %v911_v42 }
 0x173   : > { %v1656_v4 = vmov 4   ;;  %v1657_v22 = vmov 6  }
 0x174   : > { %v997_v8 = vmul.f32 %v2358_v59, %v983_v25  ;;  %v998_v40 = vmul.f32 %v2358_v59, %v984_v61  ;;  %v966_v38 = vpop.permute.xlu0 %965  ;;  %v1658_v25 = vmov 8  }
 0x175   : > { %v969_v44 = vsel %vm967_vm7, %v962_v52, %v966_v38  ;;  %v971_v47 = vsel %vm967_vm7, %v966_v38, %v962_v52 }
 0x176   : > { %v985_v34 = vmul.f32 %v2076_v49, %v969_v44  ;;  %v986_v36 = vmul.f32 %v2079_v5, %v971_v47  ;;  %v1002_v50 = vadd.f32 %v998_v40, %v956_v35  ;;  %v1001_v53 = vadd.f32 %v997_v8, %v955_v37  ;;  %v1042_v35 = vld [vmem:[%s2315_s6 + $0x8] sm:$0xff] }
 0x178   : > { %v999_v60 = vmul.f32 %v2359_v54, %v985_v34  ;;  %v1000_v63 = vmul.f32 %v2359_v54, %v986_v36  ;;  %v1043_v34 = vld [vmem:[#allocation2] sm:$0x1] }
 0x17a   : > { %v1004_v9 = vadd.f32 %v1000_v63, %v958_v1  ;;  %v1003_v58 = vadd.f32 %v999_v60, %v957_v27  ;;  %v1045_v27 = vld [vmem:[%s2317_s8 + $0x8] sm:$0xff] }
 0x181   : > { %v1010_v10 = vpop.permute.xlu1 %1009 }
 0x182   : > { %v1017_v13 = vadd.f32 %v1010_v10, %v1001_v53  ;;  %v1018_v39 = vadd.f32 %v1010_v10, %v1002_v50  ;;  %v1047_v10 = vld [vmem:[%s2318_s9 + $0x8] sm:$0xff] }
 0x184   : > { %v1021_v12 = vmul.f32 0.5, %v1017_v13  ;;  %v1022_v55 = vmul.f32 0.5, %v1018_v39 }
 0x185   : > { %v1015_v21 = vpop.permute.xlu0 %1014 }
 0x186   : > { %1565 = vtanh.f32 %v1021_v12  ;;  %v1019_v49 = vadd.f32 %v1015_v21, %v1003_v58  ;;  %v1020_v28 = vadd.f32 %v1015_v21, %v1004_v9  ;;  %v1044_v9 = vld [vmem:[%s2317_s8] sm:$0xff] }
 0x187   : > { %1567 = vtanh.f32 %v1022_v55 }
 0x188   : > { %v1023_v5 = vmul.f32 0.5, %v1019_v49  ;;  %v1024_v41 = vmul.f32 0.5, %v1020_v28 }
 0x18a   : > { %1569 = vtanh.f32 %v1023_v5 }
 0x18b   : > { %1571 = vtanh.f32 %v1024_v41 }
 0x190   : > { %v1566_v43 = vpop.eup %1565 }
 0x191   : > { %v1568_v0 = vpop.eup %1567  ;;  %v1029_v3 = vadd.f32 1.0, %v1566_v43 }
 0x192   : > { %v1030_v62 = vadd.f32 1.0, %v1568_v0 }
 0x193   : > { %v1033_v48 = vmul.f32 0.5, %v1029_v3 }
 0x194   : > { %v1570_v26 = vpop.eup %1569  ;;  %v1034_v16 = vmul.f32 0.5, %v1030_v62 }
 0x195   : > { %v1572_v15 = vpop.eup %1571  ;;  %v2141_v57 = vmul.f32 %v1033_v48, %v1017_v13  ;;  %v1031_v23 = vadd.f32 1.0, %v1570_v26  ;;  %v1046_v13 = vld [vmem:[%s2318_s9] sm:$0xff]  ;;  %v1659_v48 = vmov 9   ;;  %v1660_v26 = vmov 5  }
 0x196   : > { %v2143_v51 = vmul.f32 %v1034_v16, %v1018_v39  ;;  %v1032_v2 = vadd.f32 1.0, %v1572_v15  ;;  %v1661_v16 = vmov 11   ;;  %v1662_v15 = vmov 7  }
 0x197   : > { %v1035_v45 = vmul.f32 0.5, %v1031_v23  ;;  %v1663_v23 = vmov 12  }
 0x198   : > { %v1048_v24 = vadd.f32 %v2143_v51, %v2141_v57  ;;  %v1036_v33 = vmul.f32 0.5, %v1032_v2  ;;  %v1664_v2 = vmov 10  }
 0x199   : > { %v2147_v14 = vmul.f32 %v1035_v45, %v1019_v49  ;;  %v1665_v45 = vmov 14  }
 0x19a   : > { %1049 = vadd.xlane.f32.xlu1 %v1048_v24  ;;  %v2149_v19 = vmul.f32 %v1036_v33, %v1020_v28  ;;  %v1666_v24 = vmov 13   ;;  %v1363_v33 = vld [vmem:[%s2320_s11] sm:$0xf] }
 0x19c   : > { %v1051_v52 = vadd.f32 %v2149_v19, %v2147_v14 }
 0x19e   : > { %1052 = vadd.xlane.f32.xlu0 %v1051_v52  ;;  %v1667_v52 = vmov 15  }
 0x1ab   : > { %1110 = vperm.xlu1 %1536, %v2156_v20  }
 0x1af   : > { %1538 = vset.pattern.permute.xlu1 %v2360_v56 }
 0x1b0   : > { %1124 = vperm.xlu1 %1538, %v2156_v20  }
 0x1b4   : > { %1540 = vset.pattern.permute.xlu1 %v2361_v18  ;;  %1140 = vperm.xlu0 %1539, %v2156_v20  }
 0x1b5   : > { %1156 = vperm.xlu1 %1540, %v2156_v20  }
 0x1b8   : > { %1542 = vset.pattern.permute.xlu0 %v2362_v17 }
 0x1b9   : > { %1541 = vset.pattern.permute.xlu1 %v1656_v4 }
 0x1ba   : > { %1172 = vperm.xlu1 %1541, %v2156_v20  }
 0x1be   : > { %1544 = vset.pattern.permute.xlu1 %v1657_v22 }
 0x1bf   : > { %1204 = vperm.xlu1 %1544, %v2156_v20  }
 0x1c3   : > { %1546 = vset.pattern.permute.xlu1 %v1658_v25 }
 0x1c4   : > { %1236 = vperm.xlu1 %1546, %v2156_v20  }
 0x1c8   : > { %1547 = vset.pattern.permute.xlu1 %v2362_v17 }
 0x227   : > { %v1050_v61 = vpop.xlane.xlu1 %1049 }
 0x228   : > { %v1055_v46 = vmul.f32 0.00390625, %v1050_v61 }
 0x22a   : > { %v1057_v11 = vmul.f32 %v1055_v46, %v1041_v30 }
 0x22b   : > { %v1053_v37 = vpop.xlane.xlu0 %1052  ;;  %v1111_v56 = vpop.permute.xlu1 %1110 }
 0x22c   : > { %v1056_v6 = vmul.f32 0.00390625, %v1053_v37  ;;  %v1060_v59 = vsel %vm1059_vm8, %v1057_v11, 0.0 }
 0x22e   : > { %v1058_v7 = vmul.f32 %v1056_v6, %v1042_v35 }
 0x22f   : > { %v1125_v18 = vpop.permute.xlu1 %1124 }
 0x230   : > { %v1061_v8 = vsel %vm1059_vm8, %v1058_v7, 0.0 }
 0x231   : > { %v1062_v40 = vadd.f32 %v1061_v8, %v1060_v59  ;;  %v2363_v59 = vld [vmem:[#allocation8_spill] sm:$0xff] }
 0x233   : > { %v1063_v38 = vrot.slane %v1062_v40, 4  ;;  %v1141_v61 = vpop.permute.xlu0 %1140 }
 0x234   : > { %v1157_v4 = vpop.permute.xlu1 %1156 }
 0x235   : > { %v1064_v42 = vadd.f32 %v1063_v38, %v1062_v40 }
 0x237   : > { %v1065_v32 = vrot.slane %v1064_v42, 2 }
 0x239   : > { %v1066_v44 = vadd.f32 %v1065_v32, %v1064_v42  ;;  %v1173_v22 = vpop.permute.xlu1 %1172  ;;  %v2364_v32 = vld [vmem:[#allocation10_spill] sm:$0xff] }
 0x23b   : > { %v1067_v47 = vrot.slane %v1066_v44, 1 }
 0x23d   : > { %v1068_v36 = vadd.f32 %v1067_v47, %v1066_v44 }
 0x23e   : > { %v1205_v25 = vpop.permute.xlu1 %1204 }
 0x23f   : > { %v1069_v50 = vadd.f32 %v1068_v36, %v1043_v34  ;;  %v2365_v34 = vld [vmem:[#allocation7_spill] sm:$0xff] }
 0x241   : > { %v1070_v53 = vmul.f32 0.5, %v1069_v50 }
 0x243   : > { %1573 = vtanh.f32 %v1070_v53  ;;  %v2201_v46 = vpop.permute.xlu1 %1236 }
 0x24d   : > { %v1574_v54 = vpop.eup %1573 }
 0x24e   : > { %v1072_v60 = vadd.f32 1.0, %v1574_v54 }
 0x250   : > { %v1073_v63 = vmul.f32 0.5, %v1072_v60 }
 0x252   : > { %v1074_v1 = vmul.f32 %v1073_v63, %v1069_v50 }
 0x254   : > { %v1078_v58 = vrot.slane %v1074_v1, %v1870_v31 }
 0x256   : > { %v1080_v39 = vmul.f32 %v1078_v58, %v1045_v27  ;;  %v1079_v12 = vmul.f32 %v1078_v58, %v1044_v9  ;;  %v2366_v27 = vld [vmem:[#allocation6_spill] sm:$0xff] }
 0x258   : > { %v1084_v55 = vadd.f32 %v1080_v39, %v1047_v10  ;;  %v1083_v21 = vadd.f32 %v1079_v12, %v1046_v13 }
 0x25a   : > { %v1086_v49 = vmul.f32 0.5, %v1084_v55  ;;  %v1085_v28 = vmul.f32 0.5, %v1083_v21 }
 0x25c   : > { %1575 = vtanh.f32 %v1086_v49 }
 0x25d   : > { %1577 = vtanh.f32 %v1085_v28 }
 0x266   : > { %v1576_v5 = vpop.eup %1575 }
 0x267   : > { %v1578_v41 = vpop.eup %1577  ;;  %v1090_v43 = vadd.f32 1.0, %v1576_v5 }
 0x268   : > { %v1089_v0 = vadd.f32 1.0, %v1578_v41 }
 0x269   : > { %v1092_v3 = vmul.f32 0.5, %v1090_v43 }
 0x26a   : > { %v1091_v62 = vmul.f32 0.5, %v1089_v0  ;;  %v2367_v0 = vld [vmem:[#allocation9_spill] sm:$0xff] }
 0x26b   : > { %1100 = vperm.xlu1 %1547, %v1092_v3  }
 0x26c   : > { %1095 = vperm.xlu0 %1542, %v1091_v62  }
 0x26f   : > { %1548 = vset.pattern.permute.xlu1 %v1659_v48 }
 0x270   : > { %1543 = vset.pattern.permute.xlu0 %v1660_v26  ;;  %1252 = vperm.xlu1 %1548, %v2156_v20  }
 0x271   : > { %1188 = vperm.xlu0 %1543, %v2156_v20  }
 0x274   : > { %1550 = vset.pattern.permute.xlu1 %v1661_v16 }
 0x275   : > { %1545 = vset.pattern.permute.xlu0 %v1662_v15  ;;  %1284 = vperm.xlu1 %1550, %v2156_v20  }
 0x276   : > { %1220 = vperm.xlu0 %1545, %v2156_v20  }
 0x279   : > { %1551 = vset.pattern.permute.xlu1 %v1663_v23 }
 0x27a   : > { %1549 = vset.pattern.permute.xlu0 %v1664_v2  ;;  %1300 = vperm.xlu1 %1551, %v2156_v20   ;;  %v2368_v2 = vld [vmem:[#allocation11_spill] sm:$0xff] }
 0x27b   : > { %1268 = vperm.xlu0 %1549, %v2156_v20  }
 0x27e   : > { %1553 = vset.pattern.permute.xlu1 %v1665_v45 }
 0x27f   : > { %1552 = vset.pattern.permute.xlu0 %v1666_v24  ;;  %1332 = vperm.xlu1 %1553, %v2156_v20  }
 0x280   : > { %1316 = vperm.xlu0 %1552, %v2156_v20  }
 0x283   : > { %1554 = vset.pattern.permute.xlu1 %v1667_v52 }
 0x284   : > { %1348 = vperm.xlu1 %1554, %v2156_v20   ;;  %1555 = vset.pattern.permute.xlu0 %v2362_v17 }
 0x285   : > { %1366 = vperm.xlu0 %1555, %v1363_v33  }
 0x2ea   : > { %v1101_v11 = vpop.permute.xlu1 %1100 }
 0x2eb   : > { %v1096_v30 = vpop.permute.xlu0 %1095  ;;  %v2218_v21 = vmul.f32 %v1101_v11, %v2147_v14  ;;  %v2221_v49 = vmul.f32 %v1101_v11, %v2149_v19 }
 0x2ec   : > { %v1103_v35 = vmul.f32 %v1096_v30, %v2141_v57  ;;  %v1104_v37 = vmul.f32 %v1096_v30, %v2143_v51 }
 0x2ed   : > { %v1242_v19 = vrot.slane %v2218_v21, %v1870_v31  ;;  %v1246_v33 = vrot.slane %v2221_v49, %v1870_v31 }
 0x2ee   : > { %v1116_v6 = vrot.slane %v1103_v35, %v1870_v31  ;;  %v1120_v20 = vrot.slane %v1104_v37, %v1870_v31  ;;  %v1130_v17 = vrot.slane %v1103_v35, %v1866_v29  ;;  %v1134_v7 = vrot.slane %v1104_v37, %v1866_v29 }
 0x2ef   : > { %v1146_v8 = vrot.slane %v1103_v35, %v2363_v59  ;;  %v1150_v40 = vrot.slane %v1104_v37, %v2363_v59  ;;  %v1162_v44 = vrot.slane %v1103_v35, %v2364_v32  ;;  %v1166_v57 = vrot.slane %v1104_v37, %v2364_v32  ;;  %v1253_v53 = vpop.permute.xlu1 %1252 }
 0x2f0   : > { %v1121_v38 = vmul.f32 %v1116_v6, %v1111_v56  ;;  %v1122_v42 = vmul.f32 %v1120_v20, %v1111_v56  ;;  %v1135_v51 = vmul.f32 %v1130_v17, %v1125_v18  ;;  %v1136_v47 = vmul.f32 %v1134_v7, %v1125_v18  ;;  %v1189_v10 = vpop.permute.xlu0 %1188 }
 0x2f1   : > { %v1178_v36 = vrot.slane %v1103_v35, %v2365_v34  ;;  %v1182_v50 = vrot.slane %v1104_v37, %v2365_v34  ;;  %v1151_v54 = vmul.f32 %v1146_v8, %v1141_v61  ;;  %v1152_v60 = vmul.f32 %v1150_v40, %v1141_v61 }
 0x2f2   : > { %v1137_v63 = vadd.f32 %v1135_v51, %v1121_v38  ;;  %v1138_v1 = vadd.f32 %v1136_v47, %v1122_v42  ;;  %v1194_v9 = vrot.slane %v1103_v35, %v2366_v27  ;;  %v1198_v58 = vrot.slane %v1104_v37, %v2366_v27 }
 0x2f3   : > { %v1167_v12 = vmul.f32 %v1162_v44, %v1157_v4  ;;  %v1168_v55 = vmul.f32 %v1166_v57, %v1157_v4  ;;  %v1183_v28 = vmul.f32 %v1178_v36, %v1173_v22  ;;  %v1184_v5 = vmul.f32 %v1182_v50, %v1173_v22 }
 0x2f4   : > { %v1153_v13 = vadd.f32 %v1151_v54, %v1137_v63  ;;  %v1154_v39 = vadd.f32 %v1152_v60, %v1138_v1  ;;  %v1210_v3 = vrot.slane %v1103_v35, %v2367_v0  ;;  %v1214_v62 = vrot.slane %v1104_v37, %v2367_v0  ;;  %v1285_v48 = vpop.permute.xlu1 %1284 }
 0x2f5   : > { %v1199_v15 = vmul.f32 %v1194_v9, %v1189_v10  ;;  %v1200_v23 = vmul.f32 %v1198_v58, %v1189_v10  ;;  %v1226_v45 = vrot.slane %v1103_v35, %v2368_v2  ;;  %v1230_v14 = vrot.slane %v1104_v37, %v2368_v2  ;;  %v1221_v24 = vpop.permute.xlu0 %1220 }
 0x2f6   : > { %v1169_v41 = vadd.f32 %v1167_v12, %v1153_v13  ;;  %v1170_v43 = vadd.f32 %v1168_v55, %v1154_v39  ;;  %v1215_v18 = vmul.f32 %v1210_v3, %v1205_v25  ;;  %v1216_v4 = vmul.f32 %v1214_v62, %v1205_v25 }
 0x2f7   : > { %v1258_v22 = vrot.slane %v2218_v21, %v1866_v29  ;;  %v1262_v61 = vrot.slane %v2221_v49, %v1866_v29  ;;  %v1231_v37 = vmul.f32 %v1226_v45, %v1221_v24  ;;  %v1232_v11 = vmul.f32 %v1230_v14, %v1221_v24 }
 0x2f8   : > { %v1185_v26 = vadd.f32 %v1183_v28, %v1169_v41  ;;  %v1186_v16 = vadd.f32 %v1184_v5, %v1170_v43  ;;  %v1247_v7 = vmul.f32 %v1242_v19, %v2201_v46  ;;  %v1248_v31 = vmul.f32 %v1246_v33, %v2201_v46  ;;  %v1579_v33 = vld [vmem:[%s1864_s29] sm:$0xff]  ;;  %s1381_s29 = scalar_lea.sflag [#allocation4], %s407_s27 }
 0x2f9   : > { %v1301_v6 = vpop.permute.xlu1 %1300  ;;  %v1263_v8 = vmul.f32 %v1258_v22, %v1253_v53  ;;  %v1264_v40 = vmul.f32 %v1262_v61, %v1253_v53  ;;  %v1274_v44 = vrot.slane %v2218_v21, %v2363_v59  ;;  %v1278_v29 = vrot.slane %v2221_v49, %v2363_v59 }
 0x2fa   : > { %v1201_v52 = vadd.f32 %v1199_v15, %v1185_v26  ;;  %v1202_v56 = vadd.f32 %v1200_v23, %v1186_v16  ;;  %v1269_v25 = vpop.permute.xlu0 %1268  ;;  %v1290_v57 = vrot.slane %v2218_v21, %v2364_v32  ;;  %v1294_v51 = vrot.slane %v2221_v49, %v2364_v32 }
 0x2fb   : > { %v1279_v46 = vmul.f32 %v1274_v44, %v1269_v25  ;;  %v1280_v50 = vmul.f32 %v1278_v29, %v1269_v25  ;;  %v1306_v53 = vrot.slane %v2218_v21, %v2365_v34  ;;  %v1310_v54 = vrot.slane %v2221_v49, %v2365_v34 }
 0x2fc   : > { %v1217_v30 = vadd.f32 %v1215_v18, %v1201_v52  ;;  %v1218_v35 = vadd.f32 %v1216_v4, %v1202_v56  ;;  %v1295_v63 = vmul.f32 %v1290_v57, %v1285_v48  ;;  %v1296_v1 = vmul.f32 %v1294_v51, %v1285_v48 }
 0x2fd   : > { %v1311_v58 = vmul.f32 %v1306_v53, %v1301_v6  ;;  %v1312_v10 = vmul.f32 %v1310_v54, %v1301_v6  ;;  %v1322_v12 = vrot.slane %v2218_v21, %v2366_v27  ;;  %v1326_v55 = vrot.slane %v2221_v49, %v2366_v27 }
 0x2fe   : > { %v1233_v20 = vadd.f32 %v1231_v37, %v1217_v30  ;;  %v1234_v17 = vadd.f32 %v1232_v11, %v1218_v35  ;;  %v1333_v60 = vpop.permute.xlu1 %1332  ;;  %v1338_v34 = vrot.slane %v2218_v21, %v2367_v0  ;;  %v1342_v28 = vrot.slane %v2221_v49, %v2367_v0 }
 0x2ff   : > { %v1317_v13 = vpop.permute.xlu0 %1316  ;;  %v1354_v62 = vrot.slane %v2218_v21, %v2368_v2  ;;  %v1358_v48 = vrot.slane %v2221_v49, %v2368_v2  ;;  %v1371_v52 = vcombine.high %v1579_v33, %v1579_v33 }
 0x300   : > { %v1249_v38 = vadd.f32 %v1247_v7, %v1233_v20  ;;  %v1250_v42 = vadd.f32 %v1248_v31, %v1234_v17  ;;  %v1327_v43 = vmul.f32 %v1322_v12, %v1317_v13  ;;  %v1328_v3 = vmul.f32 %v1326_v55, %v1317_v13 }
 0x301   : > { %v1343_v15 = vmul.f32 %v1338_v34, %v1333_v60  ;;  %v1344_v23 = vmul.f32 %v1342_v28, %v1333_v60 }
 0x302   : > { %v1265_v47 = vadd.f32 %v1263_v8, %v1249_v38  ;;  %v1266_v36 = vadd.f32 %v1264_v40, %v1250_v42 }
 0x303   : > { %v1349_v26 = vpop.permute.xlu1 %1348 }
 0x304   : > { %v1281_v59 = vadd.f32 %v1279_v46, %v1265_v47  ;;  %v1282_v9 = vadd.f32 %v1280_v50, %v1266_v36  ;;  %v1359_v14 = vmul.f32 %v1354_v62, %v1349_v26  ;;  %v1360_v24 = vmul.f32 %v1358_v48, %v1349_v26  ;;  %v1367_v19 = vpop.permute.xlu0 %1366 }
 0x306   : > { %v1297_v32 = vadd.f32 %v1295_v63, %v1281_v59  ;;  %v1298_v39 = vadd.f32 %v1296_v1, %v1282_v9 }
 0x308   : > { %v1313_v5 = vadd.f32 %v1311_v58, %v1297_v32  ;;  %v1314_v41 = vadd.f32 %v1312_v10, %v1298_v39 }
 0x30a   : > { %v1329_v27 = vadd.f32 %v1327_v43, %v1313_v5  ;;  %v1330_v16 = vadd.f32 %v1328_v3, %v1314_v41 }
 0x30c   : > { %v1345_v0 = vadd.f32 %v1343_v15, %v1329_v27  ;;  %v1346_v45 = vadd.f32 %v1344_v23, %v1330_v16 }
 0x30e   : > { %v1361_v56 = vadd.f32 %v1359_v14, %v1345_v0  ;;  %v1362_v21 = vadd.f32 %v1360_v24, %v1346_v45 }
 0x310   : > { %v1369_v18 = vadd.f32 %v1367_v19, %v1361_v56  ;;  %v1370_v4 = vadd.f32 %v1367_v19, %v1362_v21 }
 0x312   : > { %v1373_v49 = vadd.f32 %v1579_v33, %v1369_v18  ;;  %v1374_v2 = vadd.f32 %v1371_v52, %v1370_v4 }
 0x314   : > { %v1377_v22 = vcombine.low %v1373_v49, %v1374_v2 }
 0x316   : > { %1379 = vst [vmem:[%s409_s17] sm:$0xff] %v1377_v22 }
 0x317   : > { %1593 = shalt.err (!%p1590_p3)
}
 0x318   : > { %s1594_s27 = scalar_lea.hbm %s2267_s21, 128  ;;  %s1598_s19 = scalar_lea.hbm %s2321_s12, 256 }
 0x319   : > { %p1595_p4 = scmp.ne.s32.totalorder %s2267_s21, %s1594_s27  ;;  %p1599_p9 = scmp.lt.u32.totalorder %s2267_s21, %s2321_s12 }
 0x31a   : > { %p1600_p10 = scmp.lt.u32.totalorder %s1598_s19, %s1594_s27  ;;  %p1602_p12 = scmp.lt.u32.totalorder %s1594_s27, %s2267_s21 }
 0x31b   : > { %p1596_p7 = pnand %p1595_p4, %p1775_p5 }
 0x31c   : > { %p1601_p11 = por %p1600_p10, %p1599_p9 }
 0x31d   : > { %p1597_p8 = pneg %p1596_p7 }
 0x31e   : > { %p1603_p13 = por %p1602_p12, %p1601_p11 }
 0x320   : > { %p1604_p0 = pnand %p1603_p13, %p1597_p8 }
 0x322   : > { %1607 = shalt.err (!%p1604_p0)
}
 0x323   : > { %1467 = dma.vmem_to_hbm [thread:$0]  (%p1775_p5), %s2269_s18, 128, %s2267_s21, %s1381_s29  }
 0x324 PF: > { %p1473_p1 = scmp.ge.s32.totalorder %s1642_s26, 2  ;;  %s1407_s0 = sand.u32 1, %s1630_s23  }
 0x325   : > { %s1408_s22 = scalar_lea.sflag [#allocation4], %s1407_s0 }
 0x326   : > { %p1470_p2 = pnand %p1473_p1, %p1779_p6 }
 0x328   : > { %1625 = dma.done.wait (!%p1470_p2), %s1408_s22, 128  }
 0x329   : > { %1627 = vsyncadd (!%p1470_p2), %s1408_s22, 4294967168  ;;  %p24_p3 = scmp.ge.s32.totalorder %s1762_s28, 4   ;;  %s2369_s23 = smov %s1634_s24 }
 0x32a   : > { %s2370_s24 = smov %s1638_s25  ;;  %s2371_s25 = smov %s1773_s13 }
 0x32b   : > { %s2372_s26 = smov %s1762_s28  ;;  %26 = sbr.rel (!%p24_p3) target bundleno = 6 (0x6), region = 103 }
 0x332   :  { %1413 = vsyncpa [#allocation4], 1 }
 0x333   :  { %1415 = vsyncpa [#allocation4 + $0x1], 1 }

</bundles_post_ra>
